<compile_context>
chip_gen: v6e
topology: v6e:2x2x1
jax: 0.10.0
libtpu: 0.0.40
codegen_flags: <defaults>
</compile_context>

<pallas_src>
import functools

import jax
import jax.numpy as jnp
from jax.experimental import pallas as pl
from jax.experimental.pallas import tpu as pltpu


# ---------------------------------------------------------------- kernel ----

def _edgeconv_kernel(k, slope,
                     ptsf_ref, ptsr_ref,           # (1,N,D) f32, (1,T,D) f32
                     wa_ref, wc_ref,               # (D,D) bf16 (BN-folded)
                     b1_ref, w2_ref, b2_ref,       # (D,1), (D,1), (1,1) f32
                     x_ref, eij_ref, mask_ref):    # (1,T,D), (1,T,N), (1,T,N)
    p_all = ptsf_ref[0]                            # (N, D) f32
    p_row = ptsr_ref[0]                            # (T, D) f32
    N = p_all.shape[0]
    T = p_row.shape[0]

    # ---- negative squared pairwise distance for this row tile (f32) ----
    sq_all = jnp.sum(p_all * p_all, axis=-1)[None, :]              # (1, N)
    sq_row = jnp.sum(p_row * p_row, axis=-1, keepdims=True)        # (T, 1)
    inner = jax.lax.dot_general(                                   # (T, N)
        p_row, p_all, (((1,), (1,)), ((), ())),
        preferred_element_type=jnp.float32)
    neg_dist = 2.0 * inner - sq_row - sq_all

    # ---- exact top-k neighbour mask (lowest-index tie-break) ----
    col = jax.lax.broadcasted_iota(jnp.int32, (T, N), 1)
    nb = jnp.zeros((T, N), jnp.float32)
    work = neg_dist
    for _ in range(k):                                             # k static
        row_max = jnp.max(work, axis=-1, keepdims=True)
        cand = jnp.where(work == row_max, col, N)
        sel_idx = jnp.min(cand, axis=-1, keepdims=True)
        sel = col == sel_idx
        nb = jnp.maximum(nb, sel.astype(jnp.float32))
        work = jnp.where(sel, -jnp.inf, work)
    is_nb = nb > 0.0                                               # (T, N)

    # ---- EdgeConv: conv(cat(p_j - p_i, p_i)) with folded BN, LeakyReLU ----
    # pre[i, :, j] = Wa @ p_j + Wc @ p_i + b1   (weights in (D_out, D_in))
    pa = p_all.astype(jnp.bfloat16)
    pr = p_row.astype(jnp.bfloat16)
    a_t = jax.lax.dot_general(                                     # (D, N)
        wa_ref[...], pa, (((1,), (1,)), ((), ())),
        preferred_element_type=jnp.float32)
    c_r = jax.lax.dot_general(                                     # (T, D)
        pr, wc_ref[...], (((1,), (1,)), ((), ())),
        preferred_element_type=jnp.float32)
    pre = a_t[None, :, :] + c_r[:, :, None] + b1_ref[...][None, :, :]
    h = jnp.maximum(pre, slope * pre)                              # (T, D, N)

    # ---- per-point feature: max over the k neighbours ----
    h_masked = jnp.where(is_nb[:, None, :], h, -1e30)
    x_ref[0] = jnp.max(h_masked, axis=-1)                          # (T, D)

    # ---- conv2 (D -> 1) + BN + LeakyReLU -> edge scores ----
    e_pre = jnp.sum(h * w2_ref[...][None, :, :], axis=1) + b2_ref[...]
    e = jnp.maximum(e_pre, slope * e_pre)                          # (T, N)

    # ---- scatter onto ones, mask, softmax over all N columns ----
    e_full = jnp.where(is_nb, e, 1.0)
    m = jnp.max(e_full, axis=-1, keepdims=True)
    z = jnp.exp(e_full - m)
    denom = jnp.sum(z, axis=-1, keepdims=True)
    eij_ref[0] = z * pl.reciprocal(denom, approx=True)
    mask_ref[0] = 1.0 - nb


# --------------------------------------------------------------- wrapper ----

def _fold_bn(conv_w, gamma, beta, mean, var, eps):
    """Fold eval-mode BatchNorm into a bias-free 1x1 conv."""
    scale = gamma / jnp.sqrt(var + eps)
    return conv_w * scale[:, None], beta - mean * scale


def _pick_row_tile(n):
    if n <= 128:
        return n
    for t in (128, 64, 32, 16, 8):
        if n % t == 0:
            return t
    return n


def edge_conv_knn(x_sbe, params, nhead, k=10, eps=1e-5):
    """x_sbe: (S, B, d_model). Returns (x, eij, mask) like EdgeConvKNN.forward."""
    S, B, E = x_sbe.shape
    D = E // nhead
    BH = B * nhead
    N = S
    assert 0 < k < N, "only the k < num_points path is implemented"

    # Exact replica of the module's permute/view/permute layout transform.
    z = jnp.transpose(x_sbe, (1, 0, 2)).reshape(S, BH, D)
    pts = jnp.transpose(z, (1, 0, 2)).astype(jnp.float32)          # (BH, N, D)

    # Fold BN (eval mode) into the 1x1 convs; split conv1 algebraically.
    w1_eff, b1_eff = _fold_bn(params["conv1_w"], params["bn1_g"],
                              params["bn1_b"], params["bn1_m"],
                              params["bn1_v"], eps)
    wa = w1_eff[:, :D].astype(jnp.bfloat16)                        # (D, D)
    wc = (w1_eff[:, D:] - w1_eff[:, :D]).astype(jnp.bfloat16)      # (D, D)
    b1_col = b1_eff[:, None].astype(jnp.float32)                   # (D, 1)

    w2_eff, b2_eff = _fold_bn(params["conv2_w"], params["bn2_g"],
                              params["bn2_b"], params["bn2_m"],
                              params["bn2_v"], eps)
    w2_col = jnp.transpose(w2_eff).astype(jnp.float32)             # (D, 1)
    b2_arr = b2_eff.reshape(1, 1).astype(jnp.float32)              # (1, 1)

    T = _pick_row_tile(N)
    grid = (BH, N // T)

    kernel = functools.partial(_edgeconv_kernel, k, 0.2)
    x_out, eij, mask_f = pl.pallas_call(
        kernel,
        out_shape=(
            jax.ShapeDtypeStruct((BH, N, D), jnp.float32),
            jax.ShapeDtypeStruct((BH, N, N), jnp.float32),
            jax.ShapeDtypeStruct((BH, N, N), jnp.float32),
        ),
        grid=grid,
        in_specs=[
            pl.BlockSpec((1, N, D), lambda b, t: (b, 0, 0)),   # all points
            pl.BlockSpec((1, T, D), lambda b, t: (b, t, 0)),   # query rows
            pl.BlockSpec((D, D), lambda b, t: (0, 0)),         # Wa
            pl.BlockSpec((D, D), lambda b, t: (0, 0)),         # Wc
            pl.BlockSpec((D, 1), lambda b, t: (0, 0)),         # b1
            pl.BlockSpec((D, 1), lambda b, t: (0, 0)),         # w2
            pl.BlockSpec((1, 1), lambda b, t: (0, 0)),         # b2
        ],
        out_specs=[
            pl.BlockSpec((1, T, D), lambda b, t: (b, t, 0)),
            pl.BlockSpec((1, T, N), lambda b, t: (b, t, 0)),
            pl.BlockSpec((1, T, N), lambda b, t: (b, t, 0)),
        ],
        compiler_params=pltpu.CompilerParams(
            dimension_semantics=("parallel", "parallel")),
    )(pts, pts, wa, wc, b1_col, w2_col, b2_arr)

    return x_out, eij, mask_f.astype(bool)


# ----------------------------------------------------------- params/ref -----

def init_params(key, d_model, nhead):
    D = d_model // nhead
    ks = jax.random.split(key, 8)
    return {
        "conv1_w": jax.random.normal(ks[0], (D, 2 * D), jnp.float32) * 0.2,
        "bn1_g": 0.9 + 0.2 * jax.random.uniform(ks[1], (D,), jnp.float32),
        "bn1_b": 0.1 * jax.random.normal(ks[2], (D,), jnp.float32),
        "bn1_m": 0.1 * jax.random.normal(ks[3], (D,), jnp.float32),
        "bn1_v": 0.9 + 0.2 * jax.random.uniform(ks[4], (D,), jnp.float32),
        "conv2_w": jax.random.normal(ks[5], (1, D), jnp.float32) * 0.2,
        "bn2_g": 0.9 + 0.2 * jax.random.uniform(ks[6], (1,), jnp.float32),
        "bn2_b": 0.1 * jax.random.normal(ks[7], (1,), jnp.float32),
        "bn2_m": jnp.zeros((1,), jnp.float32),
        "bn2_v": jnp.ones((1,), jnp.float32),
    }


def reference(x_sbe, p, nhead, k, eps=1e-5):
    """Pure-JAX replica of EdgeConvKNN.forward (eval mode), for validation."""
    S, B, E = x_sbe.shape
    D = E // nhead
    BH = B * nhead
    N = S
    z = jnp.transpose(x_sbe, (1, 0, 2)).reshape(S, BH, D)
    x_dn = jnp.transpose(z, (1, 2, 0)).astype(jnp.float32)         # (BH, D, N)
    pts = jnp.transpose(x_dn, (0, 2, 1))                           # (BH, N, D)

    inner = -2.0 * jnp.einsum("bdn,bdm->bnm", x_dn, x_dn)
    xx = jnp.sum(x_dn * x_dn, axis=1, keepdims=True)
    pdist = -xx - inner - jnp.transpose(xx, (0, 2, 1))             # (BH, N, N)
    knnidx = jax.lax.top_k(pdist, k)[1]                            # (BH, N, k)

    feat = jax.vmap(lambda pb, ib: pb[ib])(pts, knnidx)            # (BH,N,k,D)
    center = jnp.broadcast_to(pts[:, :, None, :], feat.shape)
    edge = jnp.concatenate([feat - center, center], axis=-1)       # (BH,N,k,2D)

    h = jnp.einsum("bnkc,dc->bnkd", edge, p["conv1_w"])
    h = (h - p["bn1_m"]) / jnp.sqrt(p["bn1_v"] + eps) * p["bn1_g"] + p["bn1_b"]
    h = jnp.maximum(h, 0.2 * h)                                    # (BH,N,k,D)

    x_out = jnp.max(h, axis=2)                                     # (BH,N,D)

    e = jnp.einsum("bnkd,d->bnk", h, p["conv2_w"][0])
    e = (e - p["bn2_m"][0]) / jnp.sqrt(p["bn2_v"][0] + eps) * p["bn2_g"][0] \
        + p["bn2_b"][0]
    e = jnp.maximum(e, 0.2 * e)                                    # (BH,N,k)

    onehot = jax.nn.one_hot(knnidx, N, dtype=jnp.float32)          # (BH,N,k,N)
    nb = jnp.sum(onehot, axis=2)                                   # (BH,N,N)
    mask = nb == 0.0
    e_full = (1.0 - nb) + jnp.einsum("bnkj,bnk->bnj", onehot, e)
    eij = jax.nn.softmax(e_full, axis=-1)
    return x_out, eij, mask


# ------------------------------------------------------------------ main ----

if __name__ == "__main__":
    S, B, d_model, nhead, k = 16, 2, 32, 4, 10
    BH, D = B * nhead, d_model // nhead

    key = jax.random.PRNGKey(0)
    kx, kp = jax.random.split(key)
    x = jax.random.normal(kx, (S, B, d_model), jnp.float32)
    params = init_params(kp, d_model, nhead)

    x_out, eij, mask = edge_conv_knn(x, params, nhead, k=k)
    x_out, eij, mask = jax.block_until_ready((x_out, eij, mask))

    xr, er, mr = reference(x, params, nhead, k)

    assert x_out.shape == (BH, S, D)
    assert eij.shape == (BH, S, S)
    assert mask.shape == (BH, S, S) and mask.dtype == jnp.bool_
    assert bool(jnp.array_equal(mask, mr)), "knn mask mismatch"
    assert jnp.allclose(x_out, xr, rtol=2e-2, atol=2e-2), (
        f"x max abs err = {float(jnp.max(jnp.abs(x_out - xr)))}")
    assert jnp.allclose(eij, er, rtol=2e-2, atol=2e-2), (
        f"eij max abs err = {float(jnp.max(jnp.abs(eij - er)))}")

    print("KERNEL_OK")
</pallas_src>

<mosaic_0001>
module attributes {stable_mosaic.version = 11 : i64} {
  func.func @_edgeconv_kernel(%arg0: i32, %arg1: i32, %arg2: memref<1x16x8xf32, #tpu.memory_space<vmem>>, %arg3: memref<1x16x8xf32, #tpu.memory_space<vmem>>, %arg4: memref<8x8xbf16, #tpu.memory_space<vmem>>, %arg5: memref<8x8xbf16, #tpu.memory_space<vmem>>, %arg6: memref<8x1xf32, #tpu.memory_space<vmem>>, %arg7: memref<8x1xf32, #tpu.memory_space<vmem>>, %arg8: memref<1x1xf32, #tpu.memory_space<vmem>>, %arg9: memref<1x16x8xf32, #tpu.memory_space<vmem>>, %arg10: memref<1x16x16xf32, #tpu.memory_space<vmem>>, %arg11: memref<1x16x16xf32, #tpu.memory_space<vmem>>) attributes {dimension_semantics = [#tpu.dimension_semantics<parallel>, #tpu.dimension_semantics<parallel>], iteration_bounds = array<i64: 8, 1>, scalar_prefetch = 0 : i64, scratch_operands = 0 : i64, tpu.core_type = #tpu.core_type<tc>, window_params = [{transform_indices = @transform_0, window_bounds = array<i64: 1, 16, 8>}, {transform_indices = @transform_1, window_bounds = array<i64: 1, 16, 8>}, {pipeline_mode = #tpu.pipeline_mode<synchronous>, transform_indices = @transform_2, window_bounds = array<i64: 8, 8>}, {pipeline_mode = #tpu.pipeline_mode<synchronous>, transform_indices = @transform_3, window_bounds = array<i64: 8, 8>}, {pipeline_mode = #tpu.pipeline_mode<synchronous>, transform_indices = @transform_4, window_bounds = array<i64: 8, 1>}, {pipeline_mode = #tpu.pipeline_mode<synchronous>, transform_indices = @transform_5, window_bounds = array<i64: 8, 1>}, {pipeline_mode = #tpu.pipeline_mode<synchronous>, transform_indices = @transform_6, window_bounds = array<i64: 1, 1>}, {transform_indices = @transform_7, window_bounds = array<i64: 1, 16, 8>}, {transform_indices = @transform_8, window_bounds = array<i64: 1, 16, 16>}, {transform_indices = @transform_9, window_bounds = array<i64: 1, 16, 16>}]} {
    %c0 = arith.constant 0 : index
    %c0_0 = arith.constant 0 : index
    %c0_1 = arith.constant 0 : index
    %0 = vector.load %arg2[%c0, %c0_0, %c0_1] : memref<1x16x8xf32, #tpu.memory_space<vmem>>, vector<1x16x8xf32>
    %1 = vector.shape_cast %0 : vector<1x16x8xf32> to vector<16x8xf32>
    %c0_2 = arith.constant 0 : index
    %c0_3 = arith.constant 0 : index
    %c0_4 = arith.constant 0 : index
    %2 = vector.load %arg3[%c0_2, %c0_3, %c0_4] : memref<1x16x8xf32, #tpu.memory_space<vmem>>, vector<1x16x8xf32>
    %3 = vector.shape_cast %2 : vector<1x16x8xf32> to vector<16x8xf32>
    %4 = arith.mulf %1, %1 : vector<16x8xf32>
    %cst = arith.constant dense<0.000000e+00> : vector<16xf32>
    %5 = vector.multi_reduction <add>, %4, %cst [1] : vector<16x8xf32> to vector<16xf32>
    %6 = vector.shape_cast %5 : vector<16xf32> to vector<1x16xf32>
    %7 = arith.mulf %3, %3 : vector<16x8xf32>
    %cst_5 = arith.constant dense<0.000000e+00> : vector<16xf32>
    %8 = vector.multi_reduction <add>, %7, %cst_5 [1] : vector<16x8xf32> to vector<16xf32>
    %9 = vector.shape_cast %8 : vector<16xf32> to vector<16x1xf32>
    %cst_6 = arith.constant dense<0.000000e+00> : vector<16x16xf32>
    %10 = tpu.matmul %3, %1, %cst_6 {dimension_numbers = #tpu.dot_dimension_numbers<[1], [1], [0], [0], [0, 0, 1, 0], [], []>} : vector<16x8xf32>, vector<16x8xf32>, vector<16x16xf32> -> vector<16x16xf32>
    %cst_7 = arith.constant 2.000000e+00 : f32
    %11 = vector.broadcast %cst_7 : f32 to vector<16x16xf32>
    %12 = arith.mulf %11, %10 : vector<16x16xf32>
    %13 = vector.broadcast %9 : vector<16x1xf32> to vector<16x16xf32>
    %14 = arith.subf %12, %13 : vector<16x16xf32>
    %15 = vector.broadcast %6 : vector<1x16xf32> to vector<16x16xf32>
    %16 = arith.subf %14, %15 : vector<16x16xf32>
    %17 = tpu.iota {dimensions = array<i32: 1>} : vector<16x16xi32>
    %cst_8 = arith.constant 0.000000e+00 : f32
    %18 = vector.broadcast %cst_8 : f32 to vector<16x16xf32>
    %cst_9 = arith.constant dense<0xFF800000> : vector<16xf32>
    %19 = vector.multi_reduction <maximumf>, %16, %cst_9 [1] : vector<16x16xf32> to vector<16xf32>
    %20 = vector.shape_cast %19 : vector<16xf32> to vector<16x1xf32>
    %21 = vector.broadcast %20 : vector<16x1xf32> to vector<16x16xf32>
    %22 = arith.cmpf oeq, %16, %21 : vector<16x16xf32>
    %c16_i32 = arith.constant 16 : i32
    %23 = vector.broadcast %c16_i32 : i32 to vector<16x16xi32>
    %24 = arith.select %22, %17, %23 : vector<16x16xi1>, vector<16x16xi32>
    %cst_10 = arith.constant dense<2147483647> : vector<16xi32>
    %25 = vector.multi_reduction <minsi>, %24, %cst_10 [1] : vector<16x16xi32> to vector<16xi32>
    %26 = vector.shape_cast %25 : vector<16xi32> to vector<16x1xi32>
    %27 = vector.broadcast %26 : vector<16x1xi32> to vector<16x16xi32>
    %28 = arith.cmpi eq, %17, %27 : vector<16x16xi32>
    %29 = arith.extui %28 : vector<16x16xi1> to vector<16x16xi32>
    %30 = arith.sitofp %29 : vector<16x16xi32> to vector<16x16xf32>
    %31 = arith.maximumf %18, %30 : vector<16x16xf32>
    %cst_11 = arith.constant 0xFF800000 : f32
    %32 = vector.broadcast %cst_11 : f32 to vector<16x16xf32>
    %33 = arith.select %28, %32, %16 : vector<16x16xi1>, vector<16x16xf32>
    %cst_12 = arith.constant dense<0xFF800000> : vector<16xf32>
    %34 = vector.multi_reduction <maximumf>, %33, %cst_12 [1] : vector<16x16xf32> to vector<16xf32>
    %35 = vector.shape_cast %34 : vector<16xf32> to vector<16x1xf32>
    %36 = vector.broadcast %35 : vector<16x1xf32> to vector<16x16xf32>
    %37 = arith.cmpf oeq, %33, %36 : vector<16x16xf32>
    %c16_i32_13 = arith.constant 16 : i32
    %38 = vector.broadcast %c16_i32_13 : i32 to vector<16x16xi32>
    %39 = arith.select %37, %17, %38 : vector<16x16xi1>, vector<16x16xi32>
    %cst_14 = arith.constant dense<2147483647> : vector<16xi32>
    %40 = vector.multi_reduction <minsi>, %39, %cst_14 [1] : vector<16x16xi32> to vector<16xi32>
    %41 = vector.shape_cast %40 : vector<16xi32> to vector<16x1xi32>
    %42 = vector.broadcast %41 : vector<16x1xi32> to vector<16x16xi32>
    %43 = arith.cmpi eq, %17, %42 : vector<16x16xi32>
    %44 = arith.extui %43 : vector<16x16xi1> to vector<16x16xi32>
    %45 = arith.sitofp %44 : vector<16x16xi32> to vector<16x16xf32>
    %46 = arith.maximumf %31, %45 : vector<16x16xf32>
    %cst_15 = arith.constant 0xFF800000 : f32
    %47 = vector.broadcast %cst_15 : f32 to vector<16x16xf32>
    %48 = arith.select %43, %47, %33 : vector<16x16xi1>, vector<16x16xf32>
    %cst_16 = arith.constant dense<0xFF800000> : vector<16xf32>
    %49 = vector.multi_reduction <maximumf>, %48, %cst_16 [1] : vector<16x16xf32> to vector<16xf32>
    %50 = vector.shape_cast %49 : vector<16xf32> to vector<16x1xf32>
    %51 = vector.broadcast %50 : vector<16x1xf32> to vector<16x16xf32>
    %52 = arith.cmpf oeq, %48, %51 : vector<16x16xf32>
    %c16_i32_17 = arith.constant 16 : i32
    %53 = vector.broadcast %c16_i32_17 : i32 to vector<16x16xi32>
    %54 = arith.select %52, %17, %53 : vector<16x16xi1>, vector<16x16xi32>
    %cst_18 = arith.constant dense<2147483647> : vector<16xi32>
    %55 = vector.multi_reduction <minsi>, %54, %cst_18 [1] : vector<16x16xi32> to vector<16xi32>
    %56 = vector.shape_cast %55 : vector<16xi32> to vector<16x1xi32>
    %57 = vector.broadcast %56 : vector<16x1xi32> to vector<16x16xi32>
    %58 = arith.cmpi eq, %17, %57 : vector<16x16xi32>
    %59 = arith.extui %58 : vector<16x16xi1> to vector<16x16xi32>
    %60 = arith.sitofp %59 : vector<16x16xi32> to vector<16x16xf32>
    %61 = arith.maximumf %46, %60 : vector<16x16xf32>
    %cst_19 = arith.constant 0xFF800000 : f32
    %62 = vector.broadcast %cst_19 : f32 to vector<16x16xf32>
    %63 = arith.select %58, %62, %48 : vector<16x16xi1>, vector<16x16xf32>
    %cst_20 = arith.constant dense<0xFF800000> : vector<16xf32>
    %64 = vector.multi_reduction <maximumf>, %63, %cst_20 [1] : vector<16x16xf32> to vector<16xf32>
    %65 = vector.shape_cast %64 : vector<16xf32> to vector<16x1xf32>
    %66 = vector.broadcast %65 : vector<16x1xf32> to vector<16x16xf32>
    %67 = arith.cmpf oeq, %63, %66 : vector<16x16xf32>
    %c16_i32_21 = arith.constant 16 : i32
    %68 = vector.broadcast %c16_i32_21 : i32 to vector<16x16xi32>
    %69 = arith.select %67, %17, %68 : vector<16x16xi1>, vector<16x16xi32>
    %cst_22 = arith.constant dense<2147483647> : vector<16xi32>
    %70 = vector.multi_reduction <minsi>, %69, %cst_22 [1] : vector<16x16xi32> to vector<16xi32>
    %71 = vector.shape_cast %70 : vector<16xi32> to vector<16x1xi32>
    %72 = vector.broadcast %71 : vector<16x1xi32> to vector<16x16xi32>
    %73 = arith.cmpi eq, %17, %72 : vector<16x16xi32>
    %74 = arith.extui %73 : vector<16x16xi1> to vector<16x16xi32>
    %75 = arith.sitofp %74 : vector<16x16xi32> to vector<16x16xf32>
    %76 = arith.maximumf %61, %75 : vector<16x16xf32>
    %cst_23 = arith.constant 0xFF800000 : f32
    %77 = vector.broadcast %cst_23 : f32 to vector<16x16xf32>
    %78 = arith.select %73, %77, %63 : vector<16x16xi1>, vector<16x16xf32>
    %cst_24 = arith.constant dense<0xFF800000> : vector<16xf32>
    %79 = vector.multi_reduction <maximumf>, %78, %cst_24 [1] : vector<16x16xf32> to vector<16xf32>
    %80 = vector.shape_cast %79 : vector<16xf32> to vector<16x1xf32>
    %81 = vector.broadcast %80 : vector<16x1xf32> to vector<16x16xf32>
    %82 = arith.cmpf oeq, %78, %81 : vector<16x16xf32>
    %c16_i32_25 = arith.constant 16 : i32
    %83 = vector.broadcast %c16_i32_25 : i32 to vector<16x16xi32>
    %84 = arith.select %82, %17, %83 : vector<16x16xi1>, vector<16x16xi32>
    %cst_26 = arith.constant dense<2147483647> : vector<16xi32>
    %85 = vector.multi_reduction <minsi>, %84, %cst_26 [1] : vector<16x16xi32> to vector<16xi32>
    %86 = vector.shape_cast %85 : vector<16xi32> to vector<16x1xi32>
    %87 = vector.broadcast %86 : vector<16x1xi32> to vector<16x16xi32>
    %88 = arith.cmpi eq, %17, %87 : vector<16x16xi32>
    %89 = arith.extui %88 : vector<16x16xi1> to vector<16x16xi32>
    %90 = arith.sitofp %89 : vector<16x16xi32> to vector<16x16xf32>
    %91 = arith.maximumf %76, %90 : vector<16x16xf32>
    %cst_27 = arith.constant 0xFF800000 : f32
    %92 = vector.broadcast %cst_27 : f32 to vector<16x16xf32>
    %93 = arith.select %88, %92, %78 : vector<16x16xi1>, vector<16x16xf32>
    %cst_28 = arith.constant dense<0xFF800000> : vector<16xf32>
    %94 = vector.multi_reduction <maximumf>, %93, %cst_28 [1] : vector<16x16xf32> to vector<16xf32>
    %95 = vector.shape_cast %94 : vector<16xf32> to vector<16x1xf32>
    %96 = vector.broadcast %95 : vector<16x1xf32> to vector<16x16xf32>
    %97 = arith.cmpf oeq, %93, %96 : vector<16x16xf32>
    %c16_i32_29 = arith.constant 16 : i32
    %98 = vector.broadcast %c16_i32_29 : i32 to vector<16x16xi32>
    %99 = arith.select %97, %17, %98 : vector<16x16xi1>, vector<16x16xi32>
    %cst_30 = arith.constant dense<2147483647> : vector<16xi32>
    %100 = vector.multi_reduction <minsi>, %99, %cst_30 [1] : vector<16x16xi32> to vector<16xi32>
    %101 = vector.shape_cast %100 : vector<16xi32> to vector<16x1xi32>
    %102 = vector.broadcast %101 : vector<16x1xi32> to vector<16x16xi32>
    %103 = arith.cmpi eq, %17, %102 : vector<16x16xi32>
    %104 = arith.extui %103 : vector<16x16xi1> to vector<16x16xi32>
    %105 = arith.sitofp %104 : vector<16x16xi32> to vector<16x16xf32>
    %106 = arith.maximumf %91, %105 : vector<16x16xf32>
    %cst_31 = arith.constant 0xFF800000 : f32
    %107 = vector.broadcast %cst_31 : f32 to vector<16x16xf32>
    %108 = arith.select %103, %107, %93 : vector<16x16xi1>, vector<16x16xf32>
    %cst_32 = arith.constant dense<0xFF800000> : vector<16xf32>
    %109 = vector.multi_reduction <maximumf>, %108, %cst_32 [1] : vector<16x16xf32> to vector<16xf32>
    %110 = vector.shape_cast %109 : vector<16xf32> to vector<16x1xf32>
    %111 = vector.broadcast %110 : vector<16x1xf32> to vector<16x16xf32>
    %112 = arith.cmpf oeq, %108, %111 : vector<16x16xf32>
    %c16_i32_33 = arith.constant 16 : i32
    %113 = vector.broadcast %c16_i32_33 : i32 to vector<16x16xi32>
    %114 = arith.select %112, %17, %113 : vector<16x16xi1>, vector<16x16xi32>
    %cst_34 = arith.constant dense<2147483647> : vector<16xi32>
    %115 = vector.multi_reduction <minsi>, %114, %cst_34 [1] : vector<16x16xi32> to vector<16xi32>
    %116 = vector.shape_cast %115 : vector<16xi32> to vector<16x1xi32>
    %117 = vector.broadcast %116 : vector<16x1xi32> to vector<16x16xi32>
    %118 = arith.cmpi eq, %17, %117 : vector<16x16xi32>
    %119 = arith.extui %118 : vector<16x16xi1> to vector<16x16xi32>
    %120 = arith.sitofp %119 : vector<16x16xi32> to vector<16x16xf32>
    %121 = arith.maximumf %106, %120 : vector<16x16xf32>
    %cst_35 = arith.constant 0xFF800000 : f32
    %122 = vector.broadcast %cst_35 : f32 to vector<16x16xf32>
    %123 = arith.select %118, %122, %108 : vector<16x16xi1>, vector<16x16xf32>
    %cst_36 = arith.constant dense<0xFF800000> : vector<16xf32>
    %124 = vector.multi_reduction <maximumf>, %123, %cst_36 [1] : vector<16x16xf32> to vector<16xf32>
    %125 = vector.shape_cast %124 : vector<16xf32> to vector<16x1xf32>
    %126 = vector.broadcast %125 : vector<16x1xf32> to vector<16x16xf32>
    %127 = arith.cmpf oeq, %123, %126 : vector<16x16xf32>
    %c16_i32_37 = arith.constant 16 : i32
    %128 = vector.broadcast %c16_i32_37 : i32 to vector<16x16xi32>
    %129 = arith.select %127, %17, %128 : vector<16x16xi1>, vector<16x16xi32>
    %cst_38 = arith.constant dense<2147483647> : vector<16xi32>
    %130 = vector.multi_reduction <minsi>, %129, %cst_38 [1] : vector<16x16xi32> to vector<16xi32>
    %131 = vector.shape_cast %130 : vector<16xi32> to vector<16x1xi32>
    %132 = vector.broadcast %131 : vector<16x1xi32> to vector<16x16xi32>
    %133 = arith.cmpi eq, %17, %132 : vector<16x16xi32>
    %134 = arith.extui %133 : vector<16x16xi1> to vector<16x16xi32>
    %135 = arith.sitofp %134 : vector<16x16xi32> to vector<16x16xf32>
    %136 = arith.maximumf %121, %135 : vector<16x16xf32>
    %cst_39 = arith.constant 0xFF800000 : f32
    %137 = vector.broadcast %cst_39 : f32 to vector<16x16xf32>
    %138 = arith.select %133, %137, %123 : vector<16x16xi1>, vector<16x16xf32>
    %cst_40 = arith.constant dense<0xFF800000> : vector<16xf32>
    %139 = vector.multi_reduction <maximumf>, %138, %cst_40 [1] : vector<16x16xf32> to vector<16xf32>
    %140 = vector.shape_cast %139 : vector<16xf32> to vector<16x1xf32>
    %141 = vector.broadcast %140 : vector<16x1xf32> to vector<16x16xf32>
    %142 = arith.cmpf oeq, %138, %141 : vector<16x16xf32>
    %c16_i32_41 = arith.constant 16 : i32
    %143 = vector.broadcast %c16_i32_41 : i32 to vector<16x16xi32>
    %144 = arith.select %142, %17, %143 : vector<16x16xi1>, vector<16x16xi32>
    %cst_42 = arith.constant dense<2147483647> : vector<16xi32>
    %145 = vector.multi_reduction <minsi>, %144, %cst_42 [1] : vector<16x16xi32> to vector<16xi32>
    %146 = vector.shape_cast %145 : vector<16xi32> to vector<16x1xi32>
    %147 = vector.broadcast %146 : vector<16x1xi32> to vector<16x16xi32>
    %148 = arith.cmpi eq, %17, %147 : vector<16x16xi32>
    %149 = arith.extui %148 : vector<16x16xi1> to vector<16x16xi32>
    %150 = arith.sitofp %149 : vector<16x16xi32> to vector<16x16xf32>
    %151 = arith.maximumf %136, %150 : vector<16x16xf32>
    %cst_43 = arith.constant 0xFF800000 : f32
    %152 = vector.broadcast %cst_43 : f32 to vector<16x16xf32>
    %153 = arith.select %148, %152, %138 : vector<16x16xi1>, vector<16x16xf32>
    %cst_44 = arith.constant dense<0xFF800000> : vector<16xf32>
    %154 = vector.multi_reduction <maximumf>, %153, %cst_44 [1] : vector<16x16xf32> to vector<16xf32>
    %155 = vector.shape_cast %154 : vector<16xf32> to vector<16x1xf32>
    %156 = vector.broadcast %155 : vector<16x1xf32> to vector<16x16xf32>
    %157 = arith.cmpf oeq, %153, %156 : vector<16x16xf32>
    %c16_i32_45 = arith.constant 16 : i32
    %158 = vector.broadcast %c16_i32_45 : i32 to vector<16x16xi32>
    %159 = arith.select %157, %17, %158 : vector<16x16xi1>, vector<16x16xi32>
    %cst_46 = arith.constant dense<2147483647> : vector<16xi32>
    %160 = vector.multi_reduction <minsi>, %159, %cst_46 [1] : vector<16x16xi32> to vector<16xi32>
    %161 = vector.shape_cast %160 : vector<16xi32> to vector<16x1xi32>
    %162 = vector.broadcast %161 : vector<16x1xi32> to vector<16x16xi32>
    %163 = arith.cmpi eq, %17, %162 : vector<16x16xi32>
    %164 = arith.extui %163 : vector<16x16xi1> to vector<16x16xi32>
    %165 = arith.sitofp %164 : vector<16x16xi32> to vector<16x16xf32>
    %166 = arith.maximumf %151, %165 : vector<16x16xf32>
    %cst_47 = arith.constant 0.000000e+00 : f32
    %167 = vector.broadcast %cst_47 : f32 to vector<16x16xf32>
    %168 = arith.cmpf ogt, %166, %167 : vector<16x16xf32>
    %169 = arith.truncf %1 : vector<16x8xf32> to vector<16x8xbf16>
    %170 = arith.truncf %3 : vector<16x8xf32> to vector<16x8xbf16>
    %c0_48 = arith.constant 0 : index
    %c0_49 = arith.constant 0 : index
    %171 = vector.load %arg4[%c0_48, %c0_49] : memref<8x8xbf16, #tpu.memory_space<vmem>>, vector<8x8xbf16>
    %cst_50 = arith.constant dense<0.000000e+00> : vector<8x16xf32>
    %172 = tpu.matmul %171, %169, %cst_50 {dimension_numbers = #tpu.dot_dimension_numbers<[1], [1], [0], [0], [0, 0, 1, 0], [], []>} : vector<8x8xbf16>, vector<16x8xbf16>, vector<8x16xf32> -> vector<8x16xf32>
    %c0_51 = arith.constant 0 : index
    %c0_52 = arith.constant 0 : index
    %173 = vector.load %arg5[%c0_51, %c0_52] : memref<8x8xbf16, #tpu.memory_space<vmem>>, vector<8x8xbf16>
    %cst_53 = arith.constant dense<0.000000e+00> : vector<16x8xf32>
    %174 = tpu.matmul %170, %173, %cst_53 {dimension_numbers = #tpu.dot_dimension_numbers<[1], [1], [0], [0], [0, 0, 1, 0], [], []>} : vector<16x8xbf16>, vector<8x8xbf16>, vector<16x8xf32> -> vector<16x8xf32>
    %175 = vector.shape_cast %172 : vector<8x16xf32> to vector<1x8x16xf32>
    %176 = vector.shape_cast %174 : vector<16x8xf32> to vector<16x8x1xf32>
    %177 = vector.broadcast %175 : vector<1x8x16xf32> to vector<16x8x16xf32>
    %178 = vector.broadcast %176 : vector<16x8x1xf32> to vector<16x8x16xf32>
    %179 = arith.addf %177, %178 : vector<16x8x16xf32>
    %c0_54 = arith.constant 0 : index
    %c0_55 = arith.constant 0 : index
    %180 = vector.load %arg6[%c0_54, %c0_55] : memref<8x1xf32, #tpu.memory_space<vmem>>, vector<8x1xf32>
    %181 = vector.shape_cast %180 : vector<8x1xf32> to vector<1x8x1xf32>
    %182 = vector.broadcast %181 : vector<1x8x1xf32> to vector<16x8x16xf32>
    %183 = arith.addf %179, %182 : vector<16x8x16xf32>
    %cst_56 = arith.constant 2.000000e-01 : f32
    %184 = vector.broadcast %cst_56 : f32 to vector<16x8x16xf32>
    %185 = arith.mulf %184, %183 : vector<16x8x16xf32>
    %186 = arith.maximumf %183, %185 : vector<16x8x16xf32>
    %187 = vector.shape_cast %168 : vector<16x16xi1> to vector<16x1x16xi1>
    %cst_57 = arith.constant -1.000000e+30 : f32
    %188 = vector.shape_cast %187 : vector<16x1x16xi1> to vector<16x1x16xi1>
    %189 = vector.broadcast %188 : vector<16x1x16xi1> to vector<16x8x16xi1>
    %190 = vector.broadcast %cst_57 : f32 to vector<16x8x16xf32>
    %191 = arith.select %189, %186, %190 : vector<16x8x16xi1>, vector<16x8x16xf32>
    %cst_58 = arith.constant dense<0xFF800000> : vector<16x8xf32>
    %192 = vector.multi_reduction <maximumf>, %191, %cst_58 [2] : vector<16x8x16xf32> to vector<16x8xf32>
    %c0_59 = arith.constant 0 : index
    %c0_60 = arith.constant 0 : index
    %c0_61 = arith.constant 0 : index
    %193 = vector.load %arg9[%c0_59, %c0_60, %c0_61] : memref<1x16x8xf32, #tpu.memory_space<vmem>>, vector<1x16x8xf32>
    %194 = vector.shape_cast %193 : vector<1x16x8xf32> to vector<16x8xf32>
    %195 = vector.shape_cast %192 : vector<16x8xf32> to vector<1x16x8xf32>
    tpu.vector_store %arg9[%c0_59, %c0_60, %c0_61], %195 {strides = array<i32>} : memref<1x16x8xf32, #tpu.memory_space<vmem>>, vector<1x16x8xf32>,
    %c0_62 = arith.constant 0 : index
    %c0_63 = arith.constant 0 : index
    %196 = vector.load %arg7[%c0_62, %c0_63] : memref<8x1xf32, #tpu.memory_space<vmem>>, vector<8x1xf32>
    %197 = vector.shape_cast %196 : vector<8x1xf32> to vector<1x8x1xf32>
    %198 = vector.broadcast %197 : vector<1x8x1xf32> to vector<16x8x16xf32>
    %199 = arith.mulf %186, %198 : vector<16x8x16xf32>
    %cst_64 = arith.constant dense<0.000000e+00> : vector<16x16xf32>
    %200 = vector.multi_reduction <add>, %199, %cst_64 [1] : vector<16x8x16xf32> to vector<16x16xf32>
    %c0_65 = arith.constant 0 : index
    %c0_66 = arith.constant 0 : index
    %201 = vector.load %arg8[%c0_65, %c0_66] : memref<1x1xf32, #tpu.memory_space<vmem>>, vector<1x1xf32>
    %202 = vector.broadcast %201 : vector<1x1xf32> to vector<16x16xf32>
    %203 = arith.addf %200, %202 : vector<16x16xf32>
    %cst_67 = arith.constant 2.000000e-01 : f32
    %204 = vector.broadcast %cst_67 : f32 to vector<16x16xf32>
    %205 = arith.mulf %204, %203 : vector<16x16xf32>
    %206 = arith.maximumf %203, %205 : vector<16x16xf32>
    %cst_68 = arith.constant 1.000000e+00 : f32
    %207 = vector.broadcast %cst_68 : f32 to vector<16x16xf32>
    %208 = arith.select %168, %206, %207 : vector<16x16xi1>, vector<16x16xf32>
    %cst_69 = arith.constant dense<0xFF800000> : vector<16xf32>
    %209 = vector.multi_reduction <maximumf>, %208, %cst_69 [1] : vector<16x16xf32> to vector<16xf32>
    %210 = vector.shape_cast %209 : vector<16xf32> to vector<16x1xf32>
    %211 = vector.broadcast %210 : vector<16x1xf32> to vector<16x16xf32>
    %212 = arith.subf %208, %211 : vector<16x16xf32>
    %213 = math.exp %212 : vector<16x16xf32>
    %cst_70 = arith.constant dense<0.000000e+00> : vector<16xf32>
    %214 = vector.multi_reduction <add>, %213, %cst_70 [1] : vector<16x16xf32> to vector<16xf32>
    %215 = vector.shape_cast %214 : vector<16xf32> to vector<16x1xf32>
    %216 = tpu.reciprocal %215 {approx = true} : vector<16x1xf32> -> vector<16x1xf32>
    %217 = vector.broadcast %216 : vector<16x1xf32> to vector<16x16xf32>
    %218 = arith.mulf %213, %217 : vector<16x16xf32>
    %c0_71 = arith.constant 0 : index
    %c0_72 = arith.constant 0 : index
    %c0_73 = arith.constant 0 : index
    %219 = vector.load %arg10[%c0_71, %c0_72, %c0_73] : memref<1x16x16xf32, #tpu.memory_space<vmem>>, vector<1x16x16xf32>
    %220 = vector.shape_cast %219 : vector<1x16x16xf32> to vector<16x16xf32>
    %221 = vector.shape_cast %218 : vector<16x16xf32> to vector<1x16x16xf32>
    tpu.vector_store %arg10[%c0_71, %c0_72, %c0_73], %221 {strides = array<i32>} : memref<1x16x16xf32, #tpu.memory_space<vmem>>, vector<1x16x16xf32>,
    %cst_74 = arith.constant 1.000000e+00 : f32
    %222 = vector.broadcast %cst_74 : f32 to vector<16x16xf32>
    %223 = arith.subf %222, %166 : vector<16x16xf32>
    %c0_75 = arith.constant 0 : index
    %c0_76 = arith.constant 0 : index
    %c0_77 = arith.constant 0 : index
    %224 = vector.load %arg11[%c0_75, %c0_76, %c0_77] : memref<1x16x16xf32, #tpu.memory_space<vmem>>, vector<1x16x16xf32>
    %225 = vector.shape_cast %224 : vector<1x16x16xf32> to vector<16x16xf32>
    %226 = vector.shape_cast %223 : vector<16x16xf32> to vector<1x16x16xf32>
    tpu.vector_store %arg11[%c0_75, %c0_76, %c0_77], %226 {strides = array<i32>} : memref<1x16x16xf32, #tpu.memory_space<vmem>>, vector<1x16x16xf32>,
    return
  }
  func.func @transform_0(%arg0: i32, %arg1: i32) -> (i32, i32, i32) {
    %c0_i32 = arith.constant 0 : i32
    %c0_i32_0 = arith.constant 0 : i32
    %c0_i32_1 = arith.constant 0 : i32
    return %arg0, %c0_i32, %c0_i32_0 : i32, i32, i32
  }
  func.func @transform_1(%arg0: i32, %arg1: i32) -> (i32, i32, i32) {
    %c0_i32 = arith.constant 0 : i32
    %c0_i32_0 = arith.constant 0 : i32
    return %arg0, %arg1, %c0_i32 : i32, i32, i32
  }
  func.func @transform_2(%arg0: i32, %arg1: i32) -> (i32, i32) {
    %c0_i32 = arith.constant 0 : i32
    %c0_i32_0 = arith.constant 0 : i32
    %c0_i32_1 = arith.constant 0 : i32
    return %c0_i32, %c0_i32_0 : i32, i32
  }
  func.func @transform_3(%arg0: i32, %arg1: i32) -> (i32, i32) {
    %c0_i32 = arith.constant 0 : i32
    %c0_i32_0 = arith.constant 0 : i32
    %c0_i32_1 = arith.constant 0 : i32
    return %c0_i32, %c0_i32_0 : i32, i32
  }
  func.func @transform_4(%arg0: i32, %arg1: i32) -> (i32, i32) {
    %c0_i32 = arith.constant 0 : i32
    %c0_i32_0 = arith.constant 0 : i32
    %c0_i32_1 = arith.constant 0 : i32
    return %c0_i32, %c0_i32_0 : i32, i32
  }
  func.func @transform_5(%arg0: i32, %arg1: i32) -> (i32, i32) {
    %c0_i32 = arith.constant 0 : i32
    %c0_i32_0 = arith.constant 0 : i32
    %c0_i32_1 = arith.constant 0 : i32
    return %c0_i32, %c0_i32_0 : i32, i32
  }
  func.func @transform_6(%arg0: i32, %arg1: i32) -> (i32, i32) {
    %c0_i32 = arith.constant 0 : i32
    %c0_i32_0 = arith.constant 0 : i32
    %c0_i32_1 = arith.constant 0 : i32
    return %c0_i32, %c0_i32_0 : i32, i32
  }
  func.func @transform_7(%arg0: i32, %arg1: i32) -> (i32, i32, i32) {
    %c0_i32 = arith.constant 0 : i32
    %c0_i32_0 = arith.constant 0 : i32
    return %arg0, %arg1, %c0_i32 : i32, i32, i32
  }
  func.func @transform_8(%arg0: i32, %arg1: i32) -> (i32, i32, i32) {
    %c0_i32 = arith.constant 0 : i32
    %c0_i32_0 = arith.constant 0 : i32
    return %arg0, %arg1, %c0_i32 : i32, i32, i32
  }
  func.func @transform_9(%arg0: i32, %arg1: i32) -> (i32, i32, i32) {
    %c0_i32 = arith.constant 0 : i32
    %c0_i32_0 = arith.constant 0 : i32
    return %arg0, %arg1, %c0_i32 : i32, i32, i32
  }
}

</mosaic_0001>

<bundles_post_ra>
// kernel: tpu_custom_call.1
= control target key start
LH: loop header
LB: loop body
LE: loop exit
PB: predicated region body
PF: predicated region fallthrough
CT: control target
= control target key end

     0   :  { %s3372_s0 = inlined_call_operand.vmem [shape: f32[8,16,8], index: 0, kind: input, shape index: {}]   ;;  %s3373_s1 = inlined_call_operand.vmem [shape: f32[8,16,8], index: 1, kind: input, shape index: {}]   ;;  %s3374_s2 = inlined_call_operand.vmem [shape: bf16[8,8], index: 2, kind: input, shape index: {}]   ;;  %s3375_s3 = inlined_call_operand.vmem [shape: bf16[8,8], index: 3, kind: input, shape index: {}]   ;;  %s3376_s4 = inlined_call_operand.vmem [shape: f32[8,1], index: 4, kind: input, shape index: {}]   ;;  %s3377_s5 = inlined_call_operand.vmem [shape: f32[8,1], index: 5, kind: input, shape index: {}]   ;;  %s3378_s6 = inlined_call_operand.<no memory space> [shape: f32[1,1], index: 6, kind: input, shape index: {}]   ;;  %s3379_s7 = inlined_call_operand.vmem [shape: f32[8,16,8], index: 7, kind: output, shape index: {0}]   ;;  %s3380_s8 = inlined_call_operand.hbm [shape: f32[8,16,16], index: 8, kind: output, shape index: {1}]   ;;  %s3381_s9 = inlined_call_operand.hbm [shape: f32[8,16,16], index: 9, kind: output, shape index: {2}]  }
   0x1   :  { %3397 = sst [smem:[#allocation16_spill]] %s3372_s0  ;;  %v15_v0 = vstv %s3378_s6 }
   0x2   :  { %16 = vst [vmem:[#allocation2] sm:$0x1] %v15_v0 }
   0x3   :  { %17 = vsyncpa [#allocation4], 0 }
   0x4   :  { %19 = vsyncpa [#allocation4 + $0x1], 0 }
   0x5   :  { %20 = vsyncpa [#allocation6], 0 }
   0x6   :  { %22 = vsyncpa [#allocation6 + $0x1], 0  ;;  %s2512_s11 = smov 0   ;;  %s2514_s12 = smov 0  }
   0x7   :  { %s2516_s13 = smov 0   ;;  %s2518_s14 = smov 0  }
   0x8   :  { %s2520_s15 = smov 0   ;;  %s2522_s16 = smov 0  }
   0x9 LB: > { %s2188_s6 = sadd.s32 4294967295, %s2449_s16   ;;  %s2189_s17 = sadd.s32 4294967294, %s2449_s16   ;;  %s2449_s16 = sphi %s2522_s16, %s28_s16   ;;  %s2445_s15 = sphi %s2520_s15, %s3443_s15   ;;  %s2441_s14 = sphi %s2518_s14, %s3442_s14   ;;  %s2437_s13 = sphi %s2516_s13, %s3441_s13   ;;  %s2433_s12 = sphi %s2514_s12, %s3440_s12   ;;  %s2429_s11 = sphi %s2512_s11, %s3439_s11  }
   0xa   : > { %s40_s18 = sadd.s32 1, %s2445_s15  ;;  %s236_s19 = sadd.s32 1, %s2437_s13 }
   0xb   : > { %p42_p0 = scmp.ge.s32.totalorder %s40_s18, 8  ;;  %p246_p1 = scmp.ne.s32.totalorder %s2437_s13, %s2433_s12 }
   0xc   : > { %p247_p2 = scmp.eq.s32.totalorder %s2188_s6, 7  ;;  %p252_p3 = scmp.ne.s32.totalorder %s2433_s12, %s2429_s11 }
   0xd   : > { %s3445_s18 = smov (%p42_p0, %s40_s18), 0  ;;  %p253_p5 = scmp.eq.s32.totalorder %s2189_s17, 7 }
   0xe   : > { %p2552_p4 = por %p247_p2, %p246_p1  ;;  %s231_s21 = ssub.s32 %s2445_s15, %s3445_s18 }
   0xf   : > { %p2192_p6 = scmp.ge.s32.totalorder %s2449_s16, 1  ;;  %p234_p7 = scmp.eq.s32.totalorder %s231_s21, 0 }
  0x10   : > { %p2559_p8 = por %p253_p5, %p252_p3  ;;  %p335_p9 = scmp.lt.s32.totalorder %s2449_s16, 9 }
  0x11   : > { %s2565_s23 = scalar_select %p234_p7, %s2437_s13, %s236_s19  }
  0x12   : > { %p336_p10 = pnand %p2192_p6, %p335_p9 }
  0x14   : > { %339 = sbr.rel (%p336_p10) target bundleno = 4901 (0x1325), region = 48 }
  0x19   : > { %p394_p11 = scmp.lt.s32.totalorder %s2441_s14, 7  ;;  %vm428_vm0 = vcmask 64512   ;;  %s3400_s0 = sld [smem:[#allocation16_spill]]  ;;  %v536_v14 = vlaneseq  ;;  %vm547_vm1 = vcmask 130112   ;;  %vm565_vm2 = vcmask 130048  }
  0x1a   : > { %v3384_v55 = vmov 0.0   ;;  %s2996_s29 = sand.u32 1, %s2433_s12   ;;  %s3395_s21 = sshll.u32 %s2441_s14, 8 }
  0x1b   : > { %s395_s24 = scalar_select %p394_p11, %s2441_s14, 7  ;;  %v2613_v15 = vand.u32 127, %v536_v14  ;;  %v2615_v17 = vshrl.u32 %v536_v14, 7  ;;  %2256 = vmatprep.subr.bf16.mxu1 %v3384_v55 }
  0x1c   : > { %s3394_s30 = sshll.u32 %s2996_s29, 4  ;;  %s2455_s17 = smov [#allocation5]  }
  0x1d   : > { %s2569_s25 = sshll.u32 %s395_s24, 4  ;;  %v542_v18 = vadd.s32 4294967288, %v2613_v15  ;;  %v2620_v20 = vsub.s32 %v2613_v15, %v2615_v17 }
  0x1e   : > { %s407_s10 = scalar_lea.vmem %s3373_s1, %s2569_s25  ;;  %s3254_s19 = scalar_lea.vmem %s3379_s7, %s2569_s25 }
  0x1f   : > { %s398_s28 = scalar_lea.vmem %s3400_s0, %s2569_s25  ;;  %v2585_v3 = vld [vmem:[%s407_s10] sm:$0xff]  ;;  %v2587_v4 = vld [vmem:[%s407_s10 + $0x8] sm:$0xff]  ;;  %3401 = vst [vmem:[#allocation9_spill] sm:$0xff] %v2620_v20  ;;  %v545_v21 = vsub.s32 %v542_v18, %v2615_v17  ;;  %s3025_s10 = scalar_lea.vmem [#allocation5], %s3394_s30 }
  0x20   : > { %v2575_v1 = vld [vmem:[%s398_s28 + $0x8] sm:$0xff]  ;;  %v2577_v2 = vld [vmem:[%s398_s28] sm:$0xff]  ;;  %2253 = vmatprep.mubr.msk.f32.mxu0 %vm428_vm0, %v2585_v3  ;;  %v1067_v7 = vpack.c.bf16 %v2587_v4, %v2585_v3  ;;  %v435_v8 = vmul.f32 %v2585_v3, %v2585_v3  ;;  %v436_v9 = vmul.f32 %v2587_v4, %v2587_v4  ;;  %s3269_s25 = scalar_lea.hbm %s3381_s9, %s3395_s21  ;;  %s2025_s27 = sshll.u32 %s3025_s10, 4  ;;  %s3272_s27 = int_to_ptr.vmem [resolvable:$true] %s2025_s27 }
  0x21   : > { %2249 = vmatprep.subr.msk.mxu0 %vm428_vm0, %v2575_v1  ;;  %v426_v5 = vmul.f32 %v2577_v2, %v2577_v2  ;;  %v427_v6 = vmul.f32 %v2575_v1, %v2575_v1  ;;  %v1068_v3 = vld [vmem:[%s3374_s2] sm:$0xf]  ;;  %s2343_s6 = scalar_lea.vmem %s3272_s27, 256  ;;  %s2347_s30 = sshll.u32 %s2455_s17, 4  ;;  %s2348_s30 = int_to_ptr.vmem [resolvable:$false] %s2347_s30 }
  0x22   : > { %2250 = vmatpush3.xpose.msk.msra.mxu0 %vm428_vm0, %v2575_v1  ;;  %v437_v11 = vsel %vm428_vm0, %v435_v8, 0.0  ;;  %v440_v13 = vsel %vm428_vm0, %v436_v9, 0.0  ;;  %p2344_p12 = scmp.ne.s32.totalorder %s3272_s27, %s2343_s6  ;;  %s2349_s0 = scalar_lea.vmem %s2348_s30, 512 }
  0x23   : > { %2251 = vmatprep.subr.msk.mxu0 %vm428_vm0, %v2577_v2  ;;  %v429_v10 = vsel %vm428_vm0, %v426_v5, 0.0  ;;  %v432_v12 = vsel %vm428_vm0, %v427_v6, 0.0  ;;  %438 = vadd.xlane.f32.xlu1 %v437_v11  ;;  %p2350_p1 = scmp.lt.s32.totalorder %s3272_s27, %s2348_s30  ;;  %p2351_p2 = scmp.lt.s32.totalorder %s2349_s0, %s2343_s6 }
  0x24   : > { %430 = vadd.xlane.f32.xlu0 %v429_v10  ;;  %p2345_p13 = pnand %p2344_p12, %p2552_p4 }
  0x25   : > { %p2352_p3 = por %p2351_p2, %p2350_p1 }
  0x26   : > { %2252 = vmatpush3.xpose.msk.msra.mxu0 %vm428_vm0, %v2577_v2  ;;  %p2346_p0 = pneg %p2345_p13 }
  0x27   : > { %441 = vadd.xlane.f32.xlu1 %v440_v13  ;;  %2262 = vmatprep.subr.bf16.mxu0 %v3384_v55 }
  0x28   : > { %433 = vadd.xlane.f32.xlu0 %v432_v12  ;;  %p2353_p5 = pnand %p2352_p3, %p2346_p0 }
  0x29   : > { %2254 = vmatmul.mubr.msk.f32.vlgmr.msra.gmra.mxu0 %vm428_vm0, %v2587_v4  ;;  %v3382_v4 = vmov 0  }
  0x2a   : > { %2334 = vset.pattern.permute.xlu0 %v3382_v4 }
  0xac   : > { %v439_v19 = vpop.xlane.xlu1 %438 }
  0xad   : > { %v431_v16 = vpop.xlane.xlu0 %430 }
  0xae   : > { %v541_v23 = vrot.slane %v431_v16, %v2620_v20 }
  0xb0   : > { %v442_v26 = vpop.xlane.xlu1 %441 }
  0xb1   : > { %v434_v22 = vpop.xlane.xlu0 %433 }
  0xb2   : > { %v546_v24 = vrot.slane %v434_v22, %v545_v21 }
  0xb4   : > { %v548_v31 = vsel %vm547_vm1, %v546_v24, %v541_v23 }
  0xe9   : > { %v2255_v25 = vpop.f32.mrf.mxu0 }
  0xea   : > { %v531_v27 = vmul.f32 2.0, %v2255_v25 }
  0xeb   : > { %v521_v28 = vpop.f32.mrf.mxu0 }
  0xec   : > { %v533_v29 = vsub.f32 %v531_v27, %v442_v26  ;;  %v530_v30 = vmul.f32 2.0, %v521_v28 }
  0xee   : > { %v564_v32 = vsub.f32 %v533_v29, %v548_v31  ;;  %v532_v33 = vsub.f32 %v530_v30, %v439_v19 }
  0xf0   : > { %v563_v34 = vsub.f32 %v532_v33, %v548_v31  ;;  %v569_v35 = vsel %vm565_vm2, %v564_v32, -inf }
  0xf1   : > { %570 = vmax.xlane.f32.xlu1 %v569_v35 }
  0xf2   : > { %v566_v36 = vsel %vm565_vm2, %v563_v34, -inf }
  0xf3   : > { %567 = vmax.xlane.f32.xlu0 %v566_v36 }
 0x17a   : > { %v571_v37 = vpop.xlane.xlu1 %570 }
 0x17b   : > { %vm573_vm3 = vcmp.eq.f32.partialorder %v564_v32, %v571_v37 }
 0x17c   : > { %v575_v38 = vsel %vm573_vm3, %v2613_v15, 16  ;;  %v568_v39 = vpop.xlane.xlu0 %567 }
 0x17d   : > { %vm572_vm4 = vcmp.eq.f32.partialorder %v563_v34, %v568_v39  ;;  %v591_v40 = vsel %vm565_vm2, %v575_v38, 2147483647 }
 0x17e   : > { %v574_v41 = vsel %vm572_vm4, %v2613_v15, 16  ;;  %v593_v42 = vshra.s32 %v591_v40, 16  ;;  %v592_v47 = vand.u32 65535, %v591_v40 }
 0x17f   : > { %v576_v43 = vsel %vm565_vm2, %v574_v41, 2147483647 }
 0x180   : > { %v595_v44 = vcvt.s32.f32 %v593_v42  ;;  %v578_v45 = vshra.s32 %v576_v43, 16  ;;  %v577_v48 = vand.u32 65535, %v576_v43  ;;  %v594_v50 = vcvt.s32.f32 %v592_v47 }
 0x182   : > { %596 = vmin.xlane.f32.xlu1 %v595_v44  ;;  %v580_v46 = vcvt.s32.f32 %v578_v45  ;;  %v579_v53 = vcvt.s32.f32 %v577_v48 }
 0x184   : > { %581 = vmin.xlane.f32.xlu0 %v580_v46 }
 0x20b   : > { %v597_v49 = vpop.xlane.xlu1 %596 }
 0x20c   : > { %vm598_vm5 = vcmp.eq.f32.partialorder %v595_v44, %v597_v49  ;;  %v603_v56 = vcvt.f32.s32 %v597_v49 }
 0x20d   : > { %v582_v51 = vpop.xlane.xlu0 %581  ;;  %v599_v52 = vsel %vm598_vm5, %v594_v50, inf }
 0x20e   : > { %600 = vmin.xlane.f32.xlu1 %v599_v52  ;;  %vm583_vm6 = vcmp.eq.f32.partialorder %v580_v46, %v582_v51  ;;  %v588_v57 = vcvt.f32.s32 %v582_v51  ;;  %v604_v59 = vshll.u32 %v603_v56, 16 }
 0x20f   : > { %v584_v54 = vsel %vm583_vm6, %v579_v53, inf }
 0x210   : > { %585 = vmin.xlane.f32.xlu0 %v584_v54  ;;  %v589_v62 = vshll.u32 %v588_v57, 16 }
 0x297   : > { %v601_v58 = vpop.xlane.xlu1 %600 }
 0x298   : > { %v602_v60 = vcvt.f32.s32 %v601_v58 }
 0x299   : > { %v586_v61 = vpop.xlane.xlu0 %585 }
 0x29a   : > { %v605_v63 = vadd.s32 %v604_v59, %v602_v60  ;;  %v587_v0 = vcvt.f32.s32 %v586_v61 }
 0x29c   : > { %v590_v5 = vadd.s32 %v589_v62, %v587_v0  ;;  %vm607_vm7 = vcmp.eq.s32.totalorder %v2613_v15, %v605_v63 }
 0x29d   : > { %v615_v6 = vsel %vm607_vm7, -inf, %v564_v32  ;;  %v2206_v37 = vsel %vm607_vm7, 1.0, %v3384_v55 }
 0x29e   : > { %v619_v8 = vsel %vm565_vm2, %v615_v6, -inf  ;;  %vm606_vm8 = vcmp.eq.s32.totalorder %v2613_v15, %v590_v5  ;;  %v613_v43 = vmax.f32 %v2206_v37, 0.0 }
 0x29f   : > { %620 = vmax.xlane.f32.xlu1 %v619_v8  ;;  %v614_v9 = vsel %vm606_vm8, -inf, %v563_v34  ;;  %v2205_v42 = vsel %vm606_vm8, 1.0, %v3384_v55 }
 0x2a0   : > { %v616_v10 = vsel %vm565_vm2, %v614_v9, -inf  ;;  %v612_v47 = vmax.f32 %v2205_v42, 0.0 }
 0x2a1   : > { %617 = vmax.xlane.f32.xlu0 %v616_v10 }
 0x328   : > { %v621_v11 = vpop.xlane.xlu1 %620 }
 0x329   : > { %vm623_vm9 = vcmp.eq.f32.partialorder %v615_v6, %v621_v11 }
 0x32a   : > { %v625_v12 = vsel %vm623_vm9, %v2613_v15, 16  ;;  %v618_v13 = vpop.xlane.xlu0 %617 }
 0x32b   : > { %vm622_vm10 = vcmp.eq.f32.partialorder %v614_v9, %v618_v13  ;;  %v641_v14 = vsel %vm565_vm2, %v625_v12, 2147483647 }
 0x32c   : > { %v624_v16 = vsel %vm622_vm10, %v2613_v15, 16  ;;  %v643_v18 = vshra.s32 %v641_v14, 16  ;;  %v642_v24 = vand.u32 65535, %v641_v14 }
 0x32d   : > { %v626_v19 = vsel %vm565_vm2, %v624_v16, 2147483647 }
 0x32e   : > { %v645_v21 = vcvt.s32.f32 %v643_v18  ;;  %v628_v22 = vshra.s32 %v626_v19, 16  ;;  %v627_v25 = vand.u32 65535, %v626_v19  ;;  %v644_v27 = vcvt.s32.f32 %v642_v24 }
 0x330   : > { %646 = vmin.xlane.f32.xlu1 %v645_v21  ;;  %v630_v23 = vcvt.s32.f32 %v628_v22  ;;  %v629_v30 = vcvt.s32.f32 %v627_v25 }
 0x332   : > { %631 = vmin.xlane.f32.xlu0 %v630_v23 }
 0x3b9   : > { %v647_v26 = vpop.xlane.xlu1 %646 }
 0x3ba   : > { %vm648_vm11 = vcmp.eq.f32.partialorder %v645_v21, %v647_v26  ;;  %v653_v32 = vcvt.f32.s32 %v647_v26 }
 0x3bb   : > { %v632_v28 = vpop.xlane.xlu0 %631  ;;  %v649_v29 = vsel %vm648_vm11, %v644_v27, inf }
 0x3bc   : > { %650 = vmin.xlane.f32.xlu1 %v649_v29  ;;  %vm633_vm12 = vcmp.eq.f32.partialorder %v630_v23, %v632_v28  ;;  %v638_v33 = vcvt.f32.s32 %v632_v28  ;;  %v654_v35 = vshll.u32 %v653_v32, 16 }
 0x3bd   : > { %v634_v31 = vsel %vm633_vm12, %v629_v30, inf }
 0x3be   : > { %635 = vmin.xlane.f32.xlu0 %v634_v31  ;;  %v639_v39 = vshll.u32 %v638_v33, 16 }
 0x445   : > { %v651_v34 = vpop.xlane.xlu1 %650 }
 0x446   : > { %v652_v36 = vcvt.f32.s32 %v651_v34 }
 0x447   : > { %v636_v38 = vpop.xlane.xlu0 %635 }
 0x448   : > { %v655_v40 = vadd.s32 %v654_v35, %v652_v36  ;;  %v637_v41 = vcvt.f32.s32 %v636_v38 }
 0x44a   : > { %v640_v44 = vadd.s32 %v639_v39, %v637_v41  ;;  %vm657_vm13 = vcmp.eq.s32.totalorder %v2613_v15, %v655_v40 }
 0x44b   : > { %v665_v45 = vsel %vm657_vm13, -inf, %v615_v6  ;;  %v2208_v46 = vsel %vm657_vm13, 1.0, %v3384_v55 }
 0x44c   : > { %v669_v48 = vsel %vm565_vm2, %v665_v45, -inf  ;;  %v2653_v49 = vmax.f32 %v613_v43, %v2208_v46  ;;  %vm656_vm14 = vcmp.eq.s32.totalorder %v2613_v15, %v640_v44 }
 0x44d   : > { %670 = vmax.xlane.f32.xlu1 %v669_v48  ;;  %v664_v50 = vsel %vm656_vm14, -inf, %v614_v9  ;;  %v2207_v51 = vsel %vm656_vm14, 1.0, %v3384_v55 }
 0x44e   : > { %v666_v52 = vsel %vm565_vm2, %v664_v50, -inf  ;;  %v2658_v53 = vmax.f32 %v612_v47, %v2207_v51 }
 0x44f   : > { %667 = vmax.xlane.f32.xlu0 %v666_v52 }
 0x4d6   : > { %v671_v54 = vpop.xlane.xlu1 %670 }
 0x4d7   : > { %vm673_vm15 = vcmp.eq.f32.partialorder %v665_v45, %v671_v54 }
 0x4d8   : > { %v675_v56 = vsel %vm673_vm15, %v2613_v15, 16  ;;  %v668_v57 = vpop.xlane.xlu0 %667 }
 0x4d9   : > { %vm672_vm1 = vcmp.eq.f32.partialorder %v664_v50, %v668_v57  ;;  %v691_v58 = vsel %vm565_vm2, %v675_v56, 2147483647 }
 0x4da   : > { %v674_v59 = vsel %vm672_vm1, %v2613_v15, 16  ;;  %v693_v60 = vshra.s32 %v691_v58, 16  ;;  %v692_v5 = vand.u32 65535, %v691_v58 }
 0x4db   : > { %v676_v61 = vsel %vm565_vm2, %v674_v59, 2147483647 }
 0x4dc   : > { %v695_v62 = vcvt.s32.f32 %v693_v60  ;;  %v678_v63 = vshra.s32 %v676_v61, 16  ;;  %v677_v6 = vand.u32 65535, %v676_v61  ;;  %v694_v9 = vcvt.s32.f32 %v692_v5 }
 0x4de   : > { %696 = vmin.xlane.f32.xlu1 %v695_v62  ;;  %v680_v0 = vcvt.s32.f32 %v678_v63  ;;  %v679_v12 = vcvt.s32.f32 %v677_v6 }
 0x4e0   : > { %681 = vmin.xlane.f32.xlu0 %v680_v0 }
 0x567   : > { %v697_v8 = vpop.xlane.xlu1 %696 }
 0x568   : > { %vm698_vm3 = vcmp.eq.f32.partialorder %v695_v62, %v697_v8  ;;  %v703_v14 = vcvt.f32.s32 %v697_v8 }
 0x569   : > { %v682_v10 = vpop.xlane.xlu0 %681  ;;  %v699_v11 = vsel %vm698_vm3, %v694_v9, inf }
 0x56a   : > { %700 = vmin.xlane.f32.xlu1 %v699_v11  ;;  %vm683_vm4 = vcmp.eq.f32.partialorder %v680_v0, %v682_v10  ;;  %v688_v16 = vcvt.f32.s32 %v682_v10  ;;  %v704_v19 = vshll.u32 %v703_v14, 16 }
 0x56b   : > { %v684_v13 = vsel %vm683_vm4, %v679_v12, inf }
 0x56c   : > { %685 = vmin.xlane.f32.xlu0 %v684_v13  ;;  %v689_v23 = vshll.u32 %v688_v16, 16 }
 0x5f3   : > { %v701_v18 = vpop.xlane.xlu1 %700 }
 0x5f4   : > { %v702_v21 = vcvt.f32.s32 %v701_v18 }
 0x5f5   : > { %v686_v22 = vpop.xlane.xlu0 %685 }
 0x5f6   : > { %v705_v24 = vadd.s32 %v704_v19, %v702_v21  ;;  %v687_v25 = vcvt.f32.s32 %v686_v22 }
 0x5f8   : > { %v690_v26 = vadd.s32 %v689_v23, %v687_v25  ;;  %vm707_vm5 = vcmp.eq.s32.totalorder %v2613_v15, %v705_v24 }
 0x5f9   : > { %v715_v27 = vsel %vm707_vm5, -inf, %v665_v45  ;;  %v2210_v28 = vsel %vm707_vm5, 1.0, %v3384_v55 }
 0x5fa   : > { %v719_v29 = vsel %vm565_vm2, %v715_v27, -inf  ;;  %v713_v30 = vmax.f32 %v2653_v49, %v2210_v28  ;;  %vm706_vm6 = vcmp.eq.s32.totalorder %v2613_v15, %v690_v26 }
 0x5fb   : > { %720 = vmax.xlane.f32.xlu1 %v719_v29  ;;  %v714_v31 = vsel %vm706_vm6, -inf, %v664_v50  ;;  %v2209_v32 = vsel %vm706_vm6, 1.0, %v3384_v55 }
 0x5fc   : > { %v716_v33 = vsel %vm565_vm2, %v714_v31, -inf  ;;  %v712_v34 = vmax.f32 %v2658_v53, %v2209_v32 }
 0x5fd   : > { %717 = vmax.xlane.f32.xlu0 %v716_v33 }
 0x684   : > { %v721_v35 = vpop.xlane.xlu1 %720 }
 0x685   : > { %vm723_vm7 = vcmp.eq.f32.partialorder %v715_v27, %v721_v35 }
 0x686   : > { %v725_v36 = vsel %vm723_vm7, %v2613_v15, 16  ;;  %v718_v37 = vpop.xlane.xlu0 %717 }
 0x687   : > { %v741_v38 = vsel %vm565_vm2, %v725_v36, 2147483647  ;;  %vm722_vm8 = vcmp.eq.f32.partialorder %v714_v31, %v718_v37 }
 0x688   : > { %v724_v39 = vsel %vm722_vm8, %v2613_v15, 16  ;;  %v743_v40 = vshra.s32 %v741_v38, 16  ;;  %v742_v45 = vand.u32 65535, %v741_v38 }
 0x689   : > { %v726_v41 = vsel %vm565_vm2, %v724_v39, 2147483647 }
 0x68a   : > { %v745_v42 = vcvt.s32.f32 %v743_v40  ;;  %v728_v43 = vshra.s32 %v726_v41, 16  ;;  %v727_v46 = vand.u32 65535, %v726_v41  ;;  %v744_v48 = vcvt.s32.f32 %v742_v45 }
 0x68c   : > { %746 = vmin.xlane.f32.xlu1 %v745_v42  ;;  %v730_v44 = vcvt.s32.f32 %v728_v43  ;;  %v729_v51 = vcvt.s32.f32 %v727_v46 }
 0x68e   : > { %731 = vmin.xlane.f32.xlu0 %v730_v44 }
 0x715   : > { %v747_v47 = vpop.xlane.xlu1 %746 }
 0x716   : > { %vm748_vm9 = vcmp.eq.f32.partialorder %v745_v42, %v747_v47  ;;  %v753_v53 = vcvt.f32.s32 %v747_v47 }
 0x717   : > { %v732_v49 = vpop.xlane.xlu0 %731  ;;  %v749_v50 = vsel %vm748_vm9, %v744_v48, inf }
 0x718   : > { %750 = vmin.xlane.f32.xlu1 %v749_v50  ;;  %vm733_vm10 = vcmp.eq.f32.partialorder %v730_v44, %v732_v49  ;;  %v738_v54 = vcvt.f32.s32 %v732_v49  ;;  %v754_v57 = vshll.u32 %v753_v53, 16 }
 0x719   : > { %v734_v52 = vsel %vm733_vm10, %v729_v51, inf }
 0x71a   : > { %735 = vmin.xlane.f32.xlu0 %v734_v52  ;;  %v739_v60 = vshll.u32 %v738_v54, 16 }
 0x7a1   : > { %v751_v56 = vpop.xlane.xlu1 %750 }
 0x7a2   : > { %v752_v58 = vcvt.f32.s32 %v751_v56 }
 0x7a3   : > { %v736_v59 = vpop.xlane.xlu0 %735 }
 0x7a4   : > { %v755_v61 = vadd.s32 %v754_v57, %v752_v58  ;;  %v737_v62 = vcvt.f32.s32 %v736_v59 }
 0x7a6   : > { %v740_v63 = vadd.s32 %v739_v60, %v737_v62  ;;  %vm757_vm11 = vcmp.eq.s32.totalorder %v2613_v15, %v755_v61 }
 0x7a7   : > { %v765_v0 = vsel %vm757_vm11, -inf, %v715_v27  ;;  %v2212_v5 = vsel %vm757_vm11, 1.0, %v3384_v55 }
 0x7a8   : > { %v769_v6 = vsel %vm565_vm2, %v765_v0, -inf  ;;  %v2679_v8 = vmax.f32 %v713_v30, %v2212_v5  ;;  %vm756_vm12 = vcmp.eq.s32.totalorder %v2613_v15, %v740_v63 }
 0x7a9   : > { %770 = vmax.xlane.f32.xlu1 %v769_v6  ;;  %v764_v9 = vsel %vm756_vm12, -inf, %v714_v31  ;;  %v2211_v10 = vsel %vm756_vm12, 1.0, %v3384_v55 }
 0x7aa   : > { %v766_v11 = vsel %vm565_vm2, %v764_v9, -inf  ;;  %v2684_v12 = vmax.f32 %v712_v34, %v2211_v10 }
 0x7ab   : > { %767 = vmax.xlane.f32.xlu0 %v766_v11 }
 0x832   : > { %v771_v13 = vpop.xlane.xlu1 %770 }
 0x833   : > { %vm773_vm13 = vcmp.eq.f32.partialorder %v765_v0, %v771_v13 }
 0x834   : > { %v775_v14 = vsel %vm773_vm13, %v2613_v15, 16  ;;  %v768_v16 = vpop.xlane.xlu0 %767 }
 0x835   : > { %v791_v18 = vsel %vm565_vm2, %v775_v14, 2147483647  ;;  %vm772_vm14 = vcmp.eq.f32.partialorder %v764_v9, %v768_v16 }
 0x836   : > { %v774_v19 = vsel %vm772_vm14, %v2613_v15, 16  ;;  %v793_v21 = vshra.s32 %v791_v18, 16  ;;  %v792_v26 = vand.u32 65535, %v791_v18 }
 0x837   : > { %v776_v22 = vsel %vm565_vm2, %v774_v19, 2147483647 }
 0x838   : > { %v795_v23 = vcvt.s32.f32 %v793_v21  ;;  %v778_v24 = vshra.s32 %v776_v22, 16  ;;  %v777_v27 = vand.u32 65535, %v776_v22  ;;  %v794_v29 = vcvt.s32.f32 %v792_v26 }
 0x83a   : > { %796 = vmin.xlane.f32.xlu1 %v795_v23  ;;  %v780_v25 = vcvt.s32.f32 %v778_v24  ;;  %v779_v32 = vcvt.s32.f32 %v777_v27 }
 0x83c   : > { %781 = vmin.xlane.f32.xlu0 %v780_v25 }
 0x8c3   : > { %v797_v28 = vpop.xlane.xlu1 %796 }
 0x8c4   : > { %vm798_vm15 = vcmp.eq.f32.partialorder %v795_v23, %v797_v28  ;;  %v803_v34 = vcvt.f32.s32 %v797_v28 }
 0x8c5   : > { %v782_v30 = vpop.xlane.xlu0 %781  ;;  %v799_v31 = vsel %vm798_vm15, %v794_v29, inf }
 0x8c6   : > { %800 = vmin.xlane.f32.xlu1 %v799_v31  ;;  %vm783_vm1 = vcmp.eq.f32.partialorder %v780_v25, %v782_v30  ;;  %v788_v35 = vcvt.f32.s32 %v782_v30  ;;  %v804_v37 = vshll.u32 %v803_v34, 16 }
 0x8c7   : > { %v784_v33 = vsel %vm783_vm1, %v779_v32, inf }
 0x8c8   : > { %785 = vmin.xlane.f32.xlu0 %v784_v33  ;;  %v789_v40 = vshll.u32 %v788_v35, 16 }
 0x94f   : > { %v801_v36 = vpop.xlane.xlu1 %800 }
 0x950   : > { %v802_v38 = vcvt.f32.s32 %v801_v36 }
 0x951   : > { %v786_v39 = vpop.xlane.xlu0 %785 }
 0x952   : > { %v805_v41 = vadd.s32 %v804_v37, %v802_v38  ;;  %v787_v42 = vcvt.f32.s32 %v786_v39 }
 0x954   : > { %v790_v43 = vadd.s32 %v789_v40, %v787_v42  ;;  %vm807_vm3 = vcmp.eq.s32.totalorder %v2613_v15, %v805_v41 }
 0x955   : > { %v815_v44 = vsel %vm807_vm3, -inf, %v765_v0  ;;  %v2214_v45 = vsel %vm807_vm3, 1.0, %v3384_v55 }
 0x956   : > { %v819_v46 = vsel %vm565_vm2, %v815_v44, -inf  ;;  %v813_v47 = vmax.f32 %v2679_v8, %v2214_v45  ;;  %vm806_vm4 = vcmp.eq.s32.totalorder %v2613_v15, %v790_v43 }
 0x957   : > { %820 = vmax.xlane.f32.xlu1 %v819_v46  ;;  %v814_v48 = vsel %vm806_vm4, -inf, %v764_v9  ;;  %v2213_v49 = vsel %vm806_vm4, 1.0, %v3384_v55 }
 0x958   : > { %v816_v50 = vsel %vm565_vm2, %v814_v48, -inf  ;;  %v812_v51 = vmax.f32 %v2684_v12, %v2213_v49 }
 0x959   : > { %817 = vmax.xlane.f32.xlu0 %v816_v50 }
 0x9e0   : > { %v821_v52 = vpop.xlane.xlu1 %820 }
 0x9e1   : > { %vm823_vm5 = vcmp.eq.f32.partialorder %v815_v44, %v821_v52 }
 0x9e2   : > { %v825_v53 = vsel %vm823_vm5, %v2613_v15, 16  ;;  %v818_v54 = vpop.xlane.xlu0 %817 }
 0x9e3   : > { %v841_v56 = vsel %vm565_vm2, %v825_v53, 2147483647  ;;  %vm822_vm6 = vcmp.eq.f32.partialorder %v814_v48, %v818_v54 }
 0x9e4   : > { %v824_v57 = vsel %vm822_vm6, %v2613_v15, 16  ;;  %v843_v58 = vshra.s32 %v841_v56, 16  ;;  %v842_v63 = vand.u32 65535, %v841_v56 }
 0x9e5   : > { %v826_v59 = vsel %vm565_vm2, %v824_v57, 2147483647 }
 0x9e6   : > { %v845_v60 = vcvt.s32.f32 %v843_v58  ;;  %v828_v61 = vshra.s32 %v826_v59, 16  ;;  %v827_v0 = vand.u32 65535, %v826_v59  ;;  %v844_v6 = vcvt.s32.f32 %v842_v63 }
 0x9e8   : > { %846 = vmin.xlane.f32.xlu1 %v845_v60  ;;  %v830_v62 = vcvt.s32.f32 %v828_v61  ;;  %v829_v10 = vcvt.s32.f32 %v827_v0 }
 0x9ea   : > { %831 = vmin.xlane.f32.xlu0 %v830_v62 }
 0xa71   : > { %v847_v5 = vpop.xlane.xlu1 %846 }
 0xa72   : > { %vm848_vm7 = vcmp.eq.f32.partialorder %v845_v60, %v847_v5  ;;  %v853_v12 = vcvt.f32.s32 %v847_v5 }
 0xa73   : > { %v832_v8 = vpop.xlane.xlu0 %831  ;;  %v849_v9 = vsel %vm848_vm7, %v844_v6, inf }
 0xa74   : > { %850 = vmin.xlane.f32.xlu1 %v849_v9  ;;  %vm833_vm8 = vcmp.eq.f32.partialorder %v830_v62, %v832_v8  ;;  %v838_v13 = vcvt.f32.s32 %v832_v8  ;;  %v854_v16 = vshll.u32 %v853_v12, 16 }
 0xa75   : > { %v834_v11 = vsel %vm833_vm8, %v829_v10, inf }
 0xa76   : > { %835 = vmin.xlane.f32.xlu0 %v834_v11  ;;  %v839_v21 = vshll.u32 %v838_v13, 16 }
 0xafd   : > { %v851_v14 = vpop.xlane.xlu1 %850 }
 0xafe   : > { %v852_v18 = vcvt.f32.s32 %v851_v14 }
 0xaff   : > { %v836_v19 = vpop.xlane.xlu0 %835 }
 0xb00   : > { %v855_v22 = vadd.s32 %v854_v16, %v852_v18  ;;  %v837_v23 = vcvt.f32.s32 %v836_v19 }
 0xb02   : > { %v840_v24 = vadd.s32 %v839_v21, %v837_v23  ;;  %vm857_vm9 = vcmp.eq.s32.totalorder %v2613_v15, %v855_v22 }
 0xb03   : > { %v865_v25 = vsel %vm857_vm9, -inf, %v815_v44  ;;  %v2216_v26 = vsel %vm857_vm9, 1.0, %v3384_v55 }
 0xb04   : > { %v869_v27 = vsel %vm565_vm2, %v865_v25, -inf  ;;  %v2705_v28 = vmax.f32 %v813_v47, %v2216_v26  ;;  %vm856_vm10 = vcmp.eq.s32.totalorder %v2613_v15, %v840_v24 }
 0xb05   : > { %870 = vmax.xlane.f32.xlu1 %v869_v27  ;;  %v864_v29 = vsel %vm856_vm10, -inf, %v814_v48  ;;  %v2215_v30 = vsel %vm856_vm10, 1.0, %v3384_v55 }
 0xb06   : > { %v866_v31 = vsel %vm565_vm2, %v864_v29, -inf  ;;  %v2710_v32 = vmax.f32 %v812_v51, %v2215_v30 }
 0xb07   : > { %867 = vmax.xlane.f32.xlu0 %v866_v31 }
 0xb8e   : > { %v871_v33 = vpop.xlane.xlu1 %870 }
 0xb8f   : > { %vm873_vm11 = vcmp.eq.f32.partialorder %v865_v25, %v871_v33 }
 0xb90   : > { %v875_v34 = vsel %vm873_vm11, %v2613_v15, 16  ;;  %v868_v35 = vpop.xlane.xlu0 %867  ;;  %vm2452_vm11 = vmmov 0  }
 0xb91   : > { %v891_v36 = vsel %vm565_vm2, %v875_v34, 2147483647  ;;  %vm872_vm12 = vcmp.eq.f32.partialorder %v864_v29, %v868_v35  ;;  %2264 = vmatprep.mubr.msk.bf16.mxu0 %vm2452_vm11, %v3384_v55  ;;  %2258 = vmatprep.mubr.msk.bf16.mxu1 %vm2452_vm11, %v3384_v55  ;;  %vm554_vm11 = vcmask 1044484  }
 0xb92   : > { %v874_v37 = vsel %vm872_vm12, %v2613_v15, 16  ;;  %v893_v38 = vshra.s32 %v891_v36, 16  ;;  %v892_v43 = vand.u32 65535, %v891_v36 }
 0xb93   : > { %v876_v39 = vsel %vm565_vm2, %v874_v37, 2147483647 }
 0xb94   : > { %v895_v40 = vcvt.s32.f32 %v893_v38  ;;  %v878_v41 = vshra.s32 %v876_v39, 16  ;;  %v877_v44 = vand.u32 65535, %v876_v39  ;;  %v894_v46 = vcvt.s32.f32 %v892_v43 }
 0xb96   : > { %896 = vmin.xlane.f32.xlu1 %v895_v40  ;;  %v880_v42 = vcvt.s32.f32 %v878_v41  ;;  %v879_v49 = vcvt.s32.f32 %v877_v44 }
 0xb98   : > { %881 = vmin.xlane.f32.xlu0 %v880_v42 }
 0xc1f   : > { %v897_v45 = vpop.xlane.xlu1 %896 }
 0xc20   : > { %vm898_vm13 = vcmp.eq.f32.partialorder %v895_v40, %v897_v45  ;;  %v903_v51 = vcvt.f32.s32 %v897_v45 }
 0xc21   : > { %v882_v47 = vpop.xlane.xlu0 %881  ;;  %v899_v48 = vsel %vm898_vm13, %v894_v46, inf }
 0xc22   : > { %900 = vmin.xlane.f32.xlu1 %v899_v48  ;;  %vm883_vm14 = vcmp.eq.f32.partialorder %v880_v42, %v882_v47  ;;  %v888_v52 = vcvt.f32.s32 %v882_v47  ;;  %v904_v54 = vshll.u32 %v903_v51, 16 }
 0xc23   : > { %v884_v50 = vsel %vm883_vm14, %v879_v49, inf }
 0xc24   : > { %885 = vmin.xlane.f32.xlu0 %v884_v50  ;;  %v889_v58 = vshll.u32 %v888_v52, 16 }
 0xcab   : > { %v901_v53 = vpop.xlane.xlu1 %900 }
 0xcac   : > { %v902_v56 = vcvt.f32.s32 %v901_v53 }
 0xcad   : > { %v886_v57 = vpop.xlane.xlu0 %885 }
 0xcae   : > { %v905_v59 = vadd.s32 %v904_v54, %v902_v56  ;;  %v887_v60 = vcvt.f32.s32 %v886_v57 }
 0xcb0   : > { %v890_v61 = vadd.s32 %v889_v58, %v887_v60  ;;  %vm907_vm15 = vcmp.eq.s32.totalorder %v2613_v15, %v905_v59 }
 0xcb1   : > { %v915_v62 = vsel %vm907_vm15, -inf, %v865_v25  ;;  %v2218_v63 = vsel %vm907_vm15, 1.0, %v3384_v55 }
 0xcb2   : > { %v919_v0 = vsel %vm565_vm2, %v915_v62, -inf  ;;  %v913_v5 = vmax.f32 %v2705_v28, %v2218_v63  ;;  %vm906_vm1 = vcmp.eq.s32.totalorder %v2613_v15, %v890_v61  ;;  %v1115_v61 = vld [vmem:[%s3375_s3] sm:$0xf] }
 0xcb3   : > { %920 = vmax.xlane.f32.xlu1 %v919_v0  ;;  %v914_v6 = vsel %vm906_vm1, -inf, %v864_v29  ;;  %v2217_v8 = vsel %vm906_vm1, 1.0, %v3384_v55 }
 0xcb4   : > { %v916_v9 = vsel %vm565_vm2, %v914_v6, -inf  ;;  %v912_v10 = vmax.f32 %v2710_v32, %v2217_v8 }
 0xcb5   : > { %917 = vmax.xlane.f32.xlu0 %v916_v9 }
 0xd3c   : > { %v921_v11 = vpop.xlane.xlu1 %920 }
 0xd3d   : > { %vm923_vm3 = vcmp.eq.f32.partialorder %v915_v62, %v921_v11 }
 0xd3e   : > { %v925_v12 = vsel %vm923_vm3, %v2613_v15, 16  ;;  %v918_v13 = vpop.xlane.xlu0 %917 }
 0xd3f   : > { %v941_v14 = vsel %vm565_vm2, %v925_v12, 2147483647  ;;  %vm922_vm4 = vcmp.eq.f32.partialorder %v914_v6, %v918_v13  ;;  %v1066_v12 = vpack.c.bf16 %v2575_v1, %v2577_v2  ;;  %v1193_v1 = vsub.s32 4, %v2615_v17 }
 0xd40   : > { %v924_v16 = vsel %vm922_vm4, %v2613_v15, 16  ;;  %v943_v18 = vshra.s32 %v941_v14, 16  ;;  %v942_v24 = vand.u32 65535, %v941_v14  ;;  %v1200_v2 = vsub.s32 5, %v2615_v17 }
 0xd41   : > { %v926_v19 = vsel %vm565_vm2, %v924_v16, 2147483647  ;;  %v1073_v13 = vsel %vm428_vm0, %v1066_v12, 0 }
 0xd42   : > { %v945_v21 = vcvt.s32.f32 %v943_v18  ;;  %v928_v22 = vshra.s32 %v926_v19, 16  ;;  %v927_v25 = vand.u32 65535, %v926_v19  ;;  %v944_v27 = vcvt.s32.f32 %v942_v24  ;;  %2257 = vmatpush3.bf16.xpose.msra.mxu1 %v1073_v13 }
 0xd43   : > { %v1207_v19 = vsub.s32 6, %v2615_v17 }
 0xd44   : > { %946 = vmin.xlane.f32.xlu1 %v945_v21  ;;  %v930_v23 = vcvt.s32.f32 %v928_v22  ;;  %v929_v30 = vcvt.s32.f32 %v927_v25 }
 0xd46   : > { %931 = vmin.xlane.f32.xlu0 %v930_v23 }
 0xd49   : > { %2259 = vmatmul.mubr.msk.bf16.vlgmr.msra.gmra.mxu1 %vm428_vm0, %v1068_v3  ;;  %v1186_v3 = vsub.s32 3, %v2615_v17 }
 0xdcd   : > { %v947_v26 = vpop.xlane.xlu1 %946 }
 0xdce   : > { %vm948_vm5 = vcmp.eq.f32.partialorder %v945_v21, %v947_v26  ;;  %v953_v32 = vcvt.f32.s32 %v947_v26 }
 0xdcf   : > { %v932_v28 = vpop.xlane.xlu0 %931  ;;  %v949_v29 = vsel %vm948_vm5, %v944_v27, inf }
 0xdd0   : > { %950 = vmin.xlane.f32.xlu1 %v949_v29  ;;  %vm933_vm6 = vcmp.eq.f32.partialorder %v930_v23, %v932_v28  ;;  %v938_v33 = vcvt.f32.s32 %v932_v28  ;;  %v954_v35 = vshll.u32 %v953_v32, 16 }
 0xdd1   : > { %v934_v31 = vsel %vm933_vm6, %v929_v30, inf }
 0xdd2   : > { %935 = vmin.xlane.f32.xlu0 %v934_v31  ;;  %v939_v38 = vshll.u32 %v938_v33, 16 }
 0xe59   : > { %v951_v34 = vpop.xlane.xlu1 %950 }
 0xe5a   : > { %v952_v36 = vcvt.f32.s32 %v951_v34 }
 0xe5b   : > { %v936_v37 = vpop.xlane.xlu0 %935 }
 0xe5c   : > { %v955_v39 = vadd.s32 %v954_v35, %v952_v36  ;;  %v937_v40 = vcvt.f32.s32 %v936_v37 }
 0xe5e   : > { %v940_v41 = vadd.s32 %v939_v38, %v937_v40  ;;  %vm957_vm7 = vcmp.eq.s32.totalorder %v2613_v15, %v955_v39 }
 0xe5f   : > { %v2729_v42 = vsel %vm957_vm7, -inf, %v915_v62  ;;  %v2220_v43 = vsel %vm957_vm7, 1.0, %v3384_v55  ;;  %v1120_v62 = vsel %vm428_vm0, %v1115_v61, 0  ;;  %vm549_vm7 = vcmask 1041409  }
 0xe60   : > { %v969_v44 = vsel %vm565_vm2, %v2729_v42, -inf  ;;  %v2734_v45 = vmax.f32 %v913_v5, %v2220_v43  ;;  %vm956_vm8 = vcmp.eq.s32.totalorder %v2613_v15, %v940_v41  ;;  %2263 = vmatpush3.bf16.xpose.msra.mxu0 %v1120_v62 }
 0xe61   : > { %970 = vmax.xlane.f32.xlu1 %v969_v44  ;;  %v2737_v46 = vsel %vm956_vm8, -inf, %v914_v6  ;;  %v2219_v47 = vsel %vm956_vm8, 1.0, %v3384_v55  ;;  %v1172_v44 = vsub.s32 1, %v2615_v17  ;;  %vm550_vm8 = vcmask 1042434  }
 0xe62   : > { %v966_v48 = vsel %vm565_vm2, %v2737_v46, -inf  ;;  %v2742_v49 = vmax.f32 %v912_v10, %v2219_v47  ;;  %v1291_v47 = vld [vmem:[%s3376_s4] sm:$0xff] }
 0xe63   : > { %967 = vmax.xlane.f32.xlu0 %v966_v48 }
 0xe67   : > { %2265 = vmatmul.mubr.msk.bf16.vlgmr.msra.gmra.mxu0 %vm428_vm0, %v1067_v7 }
 0xeea   : > { %v971_v50 = vpop.xlane.xlu1 %970 }
 0xeeb   : > { %vm973_vm9 = vcmp.eq.f32.partialorder %v2729_v42, %v971_v50 }
 0xeec   : > { %v975_v51 = vsel %vm973_vm9, %v2613_v15, 16  ;;  %v968_v52 = vpop.xlane.xlu0 %967 }
 0xeed   : > { %v991_v53 = vsel %vm565_vm2, %v975_v51, 2147483647  ;;  %vm972_vm10 = vcmp.eq.f32.partialorder %v2737_v46, %v968_v52  ;;  %v1179_v52 = vsub.s32 2, %v2615_v17 }
 0xeee   : > { %v974_v54 = vsel %vm972_vm10, %v2613_v15, 16  ;;  %v993_v56 = vshra.s32 %v991_v53, 16  ;;  %v992_v63 = vand.u32 65535, %v991_v53  ;;  %v1719_v53 = vld [vmem:[%s3377_s5] sm:$0xff]  ;;  %vm552_vm10 = vcmask 1043459  }
 0xeef   : > { %v976_v57 = vsel %vm565_vm2, %v974_v54, 2147483647 }
 0xef0   : > { %v995_v58 = vcvt.s32.f32 %v993_v56  ;;  %v978_v59 = vshra.s32 %v976_v57, 16  ;;  %v977_v0 = vand.u32 65535, %v976_v57  ;;  %v994_v6 = vcvt.s32.f32 %v992_v63 }
 0xef2   : > { %996 = vmin.xlane.f32.xlu1 %v995_v58  ;;  %v980_v60 = vcvt.s32.f32 %v978_v59  ;;  %v979_v10 = vcvt.s32.f32 %v977_v0  ;;  %v2822_v59 = vpop.f32.mrf.mxu1 }
 0xef4   : > { %981 = vmin.xlane.f32.xlu0 %v980_v60 }
 0xf27   : > { %v2768_v7 = vpop.f32.mrf.mxu0 }
 0xf28   : > { %v2779_v22 = vrot.slane %v2768_v7, %v1200_v2  ;;  %v2782_v23 = vrot.slane %v2768_v7, %v1207_v19  ;;  %v1194_v50 = vrot.slane %v2768_v7, %v1193_v1  ;;  %v1180_v54 = vrot.slane %v2768_v7, %v1179_v52 }
 0xf29   : > { %v2266_v14 = vpop.f32.mrf.mxu0 }
 0xf2a   : > { %v1187_v14 = vrot.slane %v2768_v7, %v1186_v3 }
 0xf2b   : > { %v2770_v16 = vpop.f32.mrf.mxu0 }
 0xf2c   : > { %v2776_v21 = vrot.slane %v2770_v16, %v1193_v1  ;;  %v1229_v51 = vrot.slane %v2770_v16, %v1172_v44  ;;  %v1257_v56 = vrot.slane %v2770_v16, %v1200_v2  ;;  %v1236_v57 = vrot.slane %v2770_v16, %v1179_v52 }
 0xf2d   : > { %v2267_v18 = vpop.f32.mrf.mxu0  ;;  %v1243_v1 = vrot.slane %v2770_v16, %v1186_v3 }
 0xf2e   : > { %v1214_v18 = vsub.s32 7, %v2615_v17 }
 0xf30   : > { %v1271_v2 = vrot.slane %v2770_v16, %v1214_v18 }
 0xf7b   : > { %v997_v5 = vpop.xlane.xlu1 %996 }
 0xf7c   : > { %vm998_vm12 = vcmp.eq.f32.partialorder %v995_v58, %v997_v5  ;;  %v1003_v24 = vcvt.f32.s32 %v997_v5  ;;  %v1264_v58 = vrot.slane %v2770_v16, %v1207_v19  ;;  %v1215_v19 = vrot.slane %v2768_v7, %v1214_v18 }
 0xf7d   : > { %v982_v8 = vpop.xlane.xlu0 %981  ;;  %v999_v9 = vsel %vm998_vm12, %v994_v6, inf  ;;  %vm556_vm12 = vcmask 1045509  }
 0xf7e   : > { %1000 = vmin.xlane.f32.xlu1 %v999_v9  ;;  %vm983_vm13 = vcmp.eq.f32.partialorder %v980_v60, %v982_v8  ;;  %v988_v25 = vcvt.f32.s32 %v982_v8  ;;  %v1004_v27 = vshll.u32 %v1003_v24, 16  ;;  %v2260_v60 = vpop.f32.mrf.mxu1 }
 0xf7f   : > { %v984_v11 = vsel %vm983_vm13, %v979_v10, inf  ;;  %vm558_vm13 = vcmask 1046534  }
 0xf80   : > { %985 = vmin.xlane.f32.xlu0 %v984_v11  ;;  %v989_v30 = vshll.u32 %v988_v25, 16  ;;  %v1112_v61 = vpop.f32.mrf.mxu1 }
 0xf82   : > { %v2261_v62 = vpop.f32.mrf.mxu1 }
0x1007   : > { %v1001_v26 = vpop.xlane.xlu1 %1000 }
0x1008   : > { %v1002_v28 = vcvt.f32.s32 %v1001_v26 }
0x1009   : > { %v986_v29 = vpop.xlane.xlu0 %985 }
0x100a   : > { %v1005_v31 = vadd.s32 %v1004_v27, %v1002_v28  ;;  %v987_v32 = vcvt.f32.s32 %v986_v29 }
0x100c   : > { %v990_v33 = vadd.s32 %v989_v30, %v987_v32  ;;  %vm1007_vm14 = vcmp.eq.s32.totalorder %v2613_v15, %v1005_v31 }
0x100d   : > { %v1015_v34 = vsel %vm1007_vm14, -inf, %v2729_v42  ;;  %v2787_v35 = vsel %vm1007_vm14, 1.0, %v3384_v55  ;;  %v2801_v42 = vsub.s32 0, %v2615_v17  ;;  %vm560_vm14 = vcmask 1047559  }
0x100e   : > { %v1019_v36 = vsel %vm565_vm2, %v1015_v34, -inf  ;;  %vm1006_vm15 = vcmp.eq.s32.totalorder %v2613_v15, %v990_v33 }
0x100f   : > { %1020 = vmax.xlane.f32.xlu1 %v1019_v36  ;;  %v1014_v38 = vsel %vm1006_vm15, -inf, %v2737_v46  ;;  %v2795_v39 = vsel %vm1006_vm15, 1.0, %v3384_v55  ;;  %v1166_v43 = vrot.slane %v2768_v7, %v2801_v42  ;;  %v1173_v46 = vrot.slane %v2768_v7, %v1172_v44 }
0x1010   : > { %v1016_v40 = vsel %vm565_vm2, %v1014_v38, -inf  ;;  %v1222_v48 = vrot.slane %v2770_v16, %v2801_v42 }
0x1011   : > { %1017 = vmax.xlane.f32.xlu0 %v1016_v40 }
0x1020   : > { %1168 = vbcast.lane.b32.xlu1 %v1166_v43, 256  ;;  %v2227_v43 = vld [vmem:[#allocation2] ss:$0 sm:$0xff] }
0x1024   : > { %1175 = vbcast.lane.b32.xlu1 %v1173_v46, 256 }
0x1027   : > { %1294 = vperm.xlu0 %2334, %v1291_v47  }
0x1028   : > { %1224 = vbcast.lane.b32.xlu1 %v1222_v48, 256 }
0x102b   : > { %1196 = vbcast.lane.b32.xlu0 %v1194_v50, 256 }
0x102c   : > { %1231 = vbcast.lane.b32.xlu1 %v1229_v51, 256 }
0x102f   : > { %1722 = vperm.xlu0 %2334, %v1719_v53  }
0x1030   : > { %1182 = vbcast.lane.b32.xlu1 %v1180_v54, 256 }
0x1033   : > { %1259 = vbcast.lane.b32.xlu0 %v1257_v56, 256 }
0x1034   : > { %1238 = vbcast.lane.b32.xlu1 %v1236_v57, 256 }
0x1037   : > { %1266 = vbcast.lane.b32.xlu0 %v1264_v58, 256 }
0x1098   : > { %v1021_v63 = vpop.xlane.xlu1 %1020 }
0x1099   : > { %vm1023_vm1 = vcmp.eq.f32.partialorder %v1015_v34, %v1021_v63 }
0x109a   : > { %v1025_v0 = vsel %vm1023_vm1, %v2613_v15, 16  ;;  %v1018_v5 = vpop.xlane.xlu0 %1017 }
0x109b   : > { %v1041_v6 = vsel %vm565_vm2, %v1025_v0, 2147483647  ;;  %vm1022_vm3 = vcmp.eq.f32.partialorder %v1014_v38, %v1018_v5 }
0x109c   : > { %v1024_v8 = vsel %vm1022_vm3, %v2613_v15, 16  ;;  %v1043_v9 = vshra.s32 %v1041_v6, 16  ;;  %v1169_v24 = vpop.permute.xlu1 %1168 }
0x109d   : > { %v1026_v10 = vsel %vm565_vm2, %v1024_v8, 2147483647  ;;  %v1275_v47 = vadd.f32 %v1169_v24, %v2822_v59 }
0x109e   : > { %v1045_v11 = vcvt.s32.f32 %v1043_v9  ;;  %v1028_v12 = vshra.s32 %v1026_v10, 16 }
0x10a0   : > { %1046 = vmin.xlane.f32.xlu1 %v1045_v11  ;;  %v1030_v13 = vcvt.s32.f32 %v1028_v12  ;;  %v1176_v25 = vpop.permute.xlu1 %1175 }
0x10a1   : > { %v1276_v50 = vadd.f32 %v1176_v25, %v2822_v59 }
0x10a2   : > { %1031 = vmin.xlane.f32.xlu0 %v1030_v13  ;;  %v2837_v26 = vpop.permute.xlu0 %1294 }
0x10a3   : > { %v1297_v51 = vadd.f32 %v2837_v26, %v1275_v47  ;;  %v1298_v54 = vadd.f32 %v2837_v26, %v1276_v50 }
0x10a4   : > { %v1225_v27 = vpop.permute.xlu1 %1224 }
0x10a5   : > { %v1283_v56 = vadd.f32 %v1225_v27, %v2822_v59  ;;  %v1313_v57 = vmul.f32 0.2, %v1297_v51  ;;  %v1314_v60 = vmul.f32 0.2, %v1298_v54 }
0x10a6   : > { %v1197_v28 = vpop.permute.xlu0 %1196 }
0x10a7   : > { %v1279_v53 = vadd.f32 %v1197_v28, %v2822_v59  ;;  %v1305_v61 = vadd.f32 %v2837_v26, %v1283_v56  ;;  %v2856_v63 = vmax.f32 %v1297_v51, %v1313_v57  ;;  %v2860_v9 = vmax.f32 %v1298_v54, %v1314_v60 }
0x10a8   : > { %v1232_v29 = vpop.permute.xlu1 %1231 }
0x10a9   : > { %v1301_v58 = vadd.f32 %v2837_v26, %v1279_v53  ;;  %v1284_v5 = vadd.f32 %v1232_v29, %v2822_v59 }
0x10aa   : > { %v2839_v30 = vpop.permute.xlu0 %1722 }
0x10ab   : > { %v1317_v8 = vmul.f32 0.2, %v1301_v58  ;;  %v1725_v12 = vmul.f32 %v2839_v30, %v2856_v63  ;;  %v1306_v3 = vadd.f32 %v2837_v26, %v1284_v5  ;;  %v1726_v24 = vmul.f32 %v2839_v30, %v2860_v9 }
0x10ac   : > { %v1183_v16 = vpop.permute.xlu1 %1182 }
0x10ad   : > { %v1277_v62 = vadd.f32 %v1183_v16, %v2822_v59  ;;  %v1741_v16 = vsel %vm565_vm2, %v1725_v12, 0.0 }
0x10ae   : > { %v1260_v31 = vpop.permute.xlu0 %1259 }
0x10b0   : > { %v1239_v32 = vpop.permute.xlu1 %1238 }
0x10b1   : > { %1189 = vbcast.lane.b32.xlu1 %v1187_v14, 256 }
0x10b2   : > { %v1267_v33 = vpop.permute.xlu0 %1266 }
0x10b5   : > { %1245 = vbcast.lane.b32.xlu1 %v1243_v1, 256  ;;  %v1289_v1 = vadd.f32 %v1267_v33, %v2822_v59 }
0x10b8   : > { %1273 = vbcast.lane.b32.xlu0 %v1271_v2, 256 }
0x10b9   : > { %1252 = vbcast.lane.b32.xlu1 %v2776_v21, 256  ;;  %v1042_v21 = vand.u32 65535, %v1041_v6  ;;  %v1288_v6 = vadd.f32 %v1260_v31, %v2822_v59 }
0x10bb   : > { %v1310_v18 = vadd.f32 %v2837_v26, %v1288_v6 }
0x10bd   : > { %1203 = vbcast.lane.b32.xlu1 %v2779_v22, 256  ;;  %v1027_v22 = vand.u32 65535, %v1026_v10  ;;  %v1321_v10 = vmul.f32 0.2, %v1305_v61 }
0x10bf   : > { %v1029_v38 = vcvt.s32.f32 %v1027_v22  ;;  %v2873_v25 = vmax.f32 %v1305_v61, %v1321_v10 }
0x10c1   : > { %1210 = vbcast.lane.b32.xlu1 %v2782_v23, 256  ;;  %v1044_v23 = vcvt.s32.f32 %v1042_v21  ;;  %v1322_v21 = vmul.f32 0.2, %v1306_v3 }
0x10c3   : > { %v2895_v56 = vmax.f32 %v1306_v3, %v1322_v21 }
0x10c5   : > { %1217 = vbcast.lane.b32.xlu1 %v1215_v19, 256  ;;  %v2869_v19 = vmax.f32 %v1301_v58, %v1317_v8  ;;  %v1734_v3 = vmul.f32 %v2839_v30, %v2895_v56 }
0x10c7   : > { %3402 = vst [vmem:[#allocation10_spill] sm:$0xff] %v2869_v19  ;;  %v1729_v51 = vmul.f32 %v2839_v30, %v2869_v19 }
0x1129   : > { %v2841_v34 = vpop.xlane.xlu1 %1046 }
0x112a   : > { %vm1048_vm4 = vcmp.eq.f32.partialorder %v1045_v11, %v2841_v34  ;;  %v1299_v11 = vadd.f32 %v2837_v26, %v1277_v62 }
0x112b   : > { %v2844_v7 = vpop.xlane.xlu0 %1031  ;;  %v1049_v36 = vsel %vm1048_vm4, %v1044_v23, inf }
0x112c   : > { %1050 = vmin.xlane.f32.xlu0 %v1049_v36  ;;  %vm1033_vm5 = vcmp.eq.f32.partialorder %v1030_v13, %v2844_v7  ;;  %v1285_v13 = vadd.f32 %v1239_v32, %v2822_v59  ;;  %v1315_v29 = vmul.f32 0.2, %v1299_v11  ;;  %v1326_v36 = vmul.f32 0.2, %v1310_v18 }
0x112d   : > { %v1034_v40 = vsel %vm1033_vm5, %v1029_v38, inf  ;;  %v1190_v44 = vpop.permute.xlu1 %1189  ;;  %v1311_v38 = vadd.f32 %v2837_v26, %v1289_v1 }
0x112e   : > { %1035 = vmin.xlane.f32.xlu1 %v1034_v40  ;;  %v1278_v27 = vadd.f32 %v1190_v44, %v2822_v59  ;;  %v1307_v31 = vadd.f32 %v2837_v26, %v1285_v13  ;;  %v1742_v40 = vrot.slane %v1741_v16, 4  ;;  %v1733_v44 = vmul.f32 %v2839_v30, %v2873_v25 }
0x112f   : > { %v1274_v14 = vpop.permute.xlu0 %1273  ;;  %v2889_v50 = vmax.f32 %v1299_v11, %v1315_v29  ;;  %v2900_v61 = vmax.f32 %v1310_v18, %v1326_v36  ;;  %v1327_v62 = vmul.f32 0.2, %v1311_v38 }
0x1130   : > { %v1290_v32 = vadd.f32 %v1274_v14, %v2822_v59  ;;  %v1797_v6 = vsel %vm565_vm2, %v1733_v44, 0.0 }
0x1131   : > { %v1246_v46 = vpop.permute.xlu1 %1245  ;;  %3403 = vst [vmem:[#allocation11_spill] sm:$0xff] %v2900_v61 }
0x1132   : > { %v1286_v28 = vadd.f32 %v1246_v46, %v2822_v59  ;;  %v1300_v46 = vadd.f32 %v2837_v26, %v1278_v27  ;;  %v1312_v53 = vadd.f32 %v2837_v26, %v1290_v32  ;;  %v1798_v32 = vrot.slane %v1797_v6, 4 }
0x1134   : > { %v1308_v47 = vadd.f32 %v2837_v26, %v1286_v28  ;;  %v1316_v8 = vmul.f32 0.2, %v1300_v46  ;;  %v1328_v12 = vmul.f32 0.2, %v1312_v53 }
0x1135   : > { %v1253_v48 = vpop.permute.xlu1 %1252 }
0x1136   : > { %v1287_v54 = vadd.f32 %v1253_v48, %v2822_v59  ;;  %v1324_v10 = vmul.f32 0.2, %v1308_v47  ;;  %v1769_v48 = vsel %vm565_vm2, %v1729_v51, 0.0 }
0x1137   : > { %v1770_v29 = vrot.slane %v1769_v48, 4 }
0x1138   : > { %v1309_v13 = vadd.f32 %v2837_v26, %v1287_v54  ;;  %v1799_v54 = vadd.f32 %v1798_v32, %v1797_v6 }
0x1139   : > { %v1204_v52 = vpop.permute.xlu1 %1203  ;;  %v1771_v51 = vadd.f32 %v1770_v29, %v1769_v48 }
0x113a   : > { %v1280_v33 = vadd.f32 %v1204_v52, %v2822_v59  ;;  %v1323_v52 = vmul.f32 0.2, %v1307_v31 }
0x113c   : > { %v1302_v57 = vadd.f32 %v2837_v26, %v1280_v33  ;;  %v2906_v11 = vmax.f32 %v1307_v31, %v1323_v52  ;;  %v2917_v31 = vmax.f32 %v1308_v47, %v1324_v10  ;;  %v2922_v33 = vmax.f32 %v1312_v53, %v1328_v12 }
0x113d   : > { %v1211_v0 = vpop.permute.xlu1 %1210 }
0x113e   : > { %v1281_v22 = vadd.f32 %v1211_v0, %v2822_v59  ;;  %v1743_v0 = vadd.f32 %v1742_v40, %v1741_v16  ;;  %v1318_v14 = vmul.f32 0.2, %v1302_v57  ;;  %v2915_v16 = vmax.f32 %v1300_v46, %v1316_v8  ;;  %3406 = vst [vmem:[#allocation14_spill] sm:$0xff] %v2922_v33 }
0x113f   : > { %v1735_v21 = vmul.f32 %v2839_v30, %v2906_v11  ;;  %v1736_v53 = vmul.f32 %v2839_v30, %v2917_v31 }
0x1140   : > { %v1303_v58 = vadd.f32 %v2837_v26, %v1281_v22  ;;  %v1744_v27 = vrot.slane %v1743_v0, 2  ;;  %3405 = vst [vmem:[#allocation13_spill] sm:$0xff] %v2915_v16  ;;  %v1325_v22 = vmul.f32 0.2, %v1309_v13  ;;  %v2925_v36 = vmax.f32 %v1302_v57, %v1318_v14 }
0x1141   : > { %v1218_v2 = vpop.permute.xlu1 %1217  ;;  %v1728_v52 = vmul.f32 %v2839_v30, %v2915_v16  ;;  %v1772_v14 = vrot.slane %v1771_v51, 2 }
0x1142   : > { %1860 = vperm.xlu0 %2334, %v2227_v43   ;;  %v1282_v23 = vadd.f32 %v1218_v2, %v2822_v59  ;;  %v1748_v43 = vsel %vm565_vm2, %v1726_v24, 0.0  ;;  %v1727_v59 = vmul.f32 %v2839_v30, %v2889_v50  ;;  %v1319_v18 = vmul.f32 0.2, %v1303_v58 }
0x1143   : > { %v1749_v5 = vrot.slane %v1748_v43, 4  ;;  %v1738_v2 = vmul.f32 %v2839_v30, %v2900_v61  ;;  %v2913_v24 = vmax.f32 %v1311_v38, %v1327_v62  ;;  %v2941_v62 = vmax.f32 %v1309_v13, %v1325_v22 }
0x1144   : > { %v1304_v60 = vadd.f32 %v2837_v26, %v1282_v23  ;;  %v1755_v26 = vsel %vm565_vm2, %v1727_v59, 0.0  ;;  %v1804_v23 = vsel %vm565_vm2, %v1734_v3, 0.0  ;;  %v2927_v38 = vmax.f32 %v1303_v58, %v1319_v18 }
0x1145   : > { %3404 = vst [vmem:[#allocation12_spill] sm:$0xff] %v2913_v24  ;;  %v1750_v28 = vadd.f32 %v1749_v5, %v1748_v43  ;;  %v1832_v43 = vsel %vm565_vm2, %v1738_v2, 0.0  ;;  %v1739_v44 = vmul.f32 %v2839_v30, %v2913_v24  ;;  %v1756_v47 = vrot.slane %v1755_v26, 4  ;;  %3407 = vst [vmem:[#allocation15_spill] sm:$0xff] %v2941_v62 }
0x1146   : > { %v1320_v1 = vmul.f32 0.2, %v1304_v60  ;;  %v1805_v57 = vrot.slane %v1804_v23, 4  ;;  %v1811_v58 = vsel %vm565_vm2, %v1735_v21, 0.0  ;;  %v1833_v5 = vrot.slane %v1832_v43, 4 }
0x1147   : > { %v1751_v46 = vrot.slane %v1750_v28, 2  ;;  %v1730_v8 = vmul.f32 %v2839_v30, %v2925_v36  ;;  %v1731_v10 = vmul.f32 %v2839_v30, %v2927_v38  ;;  %v1745_v48 = vadd.f32 %v1744_v27, %v1743_v0 }
0x1148   : > { %v2929_v40 = vmax.f32 %v1304_v60, %v1320_v1  ;;  %v1740_v60 = vmul.f32 %v2839_v30, %v2922_v33  ;;  %v1839_v6 = vsel %vm565_vm2, %v1739_v44, 0.0  ;;  %v1757_v3 = vadd.f32 %v1756_v47, %v1755_v26 }
0x1149   : > { %v1752_v12 = vadd.f32 %v1751_v46, %v1750_v28  ;;  %v1812_v18 = vrot.slane %v1811_v58, 4  ;;  %v1762_v13 = vsel %vm565_vm2, %v1728_v52, 0.0  ;;  %v1818_v1 = vsel %vm565_vm2, %v1736_v53, 0.0 }
0x114a   : > { %v1732_v59 = vmul.f32 %v2839_v30, %v2929_v40  ;;  %v1806_v2 = vadd.f32 %v1805_v57, %v1804_v23  ;;  %v1846_v29 = vsel %vm565_vm2, %v1740_v60, 0.0  ;;  %v1737_v32 = vmul.f32 %v2839_v30, %v2941_v62 }
0x114b   : > { %v1800_v21 = vrot.slane %v1799_v54, 2  ;;  %v1834_v22 = vadd.f32 %v1833_v5, %v1832_v43  ;;  %v1840_v4 = vrot.slane %v1839_v6, 4  ;;  %v1776_v0 = vsel %vm565_vm2, %v1730_v8, 0.0 }
0x114c   : > { %v1783_v27 = vsel %vm565_vm2, %v1731_v10, 0.0  ;;  %v1790_v28 = vsel %vm565_vm2, %v1732_v59, 0.0  ;;  %v1763_v26 = vrot.slane %v1762_v13, 4  ;;  %v1819_v44 = vrot.slane %v1818_v1, 4 }
0x114d   : > { %v1758_v46 = vrot.slane %v1757_v3, 2  ;;  %v1773_v47 = vadd.f32 %v1772_v14, %v1771_v51  ;;  %v1813_v52 = vadd.f32 %v1812_v18, %v1811_v58  ;;  %v1847_v23 = vrot.slane %v1846_v29, 4 }
0x114e   : > { %v1746_v53 = vrot.slane %v1745_v48, 1  ;;  %v1807_v57 = vrot.slane %v1806_v2, 2  ;;  %v1825_v60 = vsel %vm565_vm2, %v1737_v32, 0.0  ;;  %v1777_v30 = vrot.slane %v1776_v0, 4 }
0x114f   : > { %v1784_v41 = vrot.slane %v1783_v27, 4  ;;  %v1791_v43 = vrot.slane %v1790_v28, 4  ;;  %v1841_v5 = vadd.f32 %v1840_v4, %v1839_v6  ;;  %v1753_v37 = vrot.slane %v1752_v12, 1 }
0x1150   : > { %v1801_v8 = vadd.f32 %v1800_v21, %v1799_v54  ;;  %v1835_v55 = vrot.slane %v1834_v22, 2  ;;  %v1764_v10 = vadd.f32 %v1763_v26, %v1762_v13  ;;  %v1820_v33 = vadd.f32 %v1819_v44, %v1818_v1 }
0x1151   : > { %v1759_v59 = vadd.f32 %v1758_v46, %v1757_v3  ;;  %v1774_v24 = vrot.slane %v1773_v47, 1  ;;  %v1814_v61 = vrot.slane %v1813_v52, 2  ;;  %v1848_v62 = vadd.f32 %v1847_v23, %v1846_v29 }
0x1152   : > { %v1826_v51 = vrot.slane %v1825_v60, 4  ;;  %v2959_v58 = vadd.f32 %v1746_v53, %v1745_v48  ;;  %v1778_v14 = vadd.f32 %v1777_v30, %v1776_v0  ;;  %v1785_v18 = vadd.f32 %v1784_v41, %v1783_v27 }
0x1153   : > { %v1792_v20 = vadd.f32 %v1791_v43, %v1790_v28  ;;  %v1808_v32 = vadd.f32 %v1807_v57, %v1806_v2  ;;  %v1842_v16 = vrot.slane %v1841_v5, 2  ;;  %v2961_v19 = vadd.f32 %v1753_v37, %v1752_v12 }
0x1154   : > { %v1802_v4 = vrot.slane %v1801_v8, 1  ;;  %v1836_v6 = vadd.f32 %v1835_v55, %v1834_v22  ;;  %v1765_v54 = vrot.slane %v1764_v10, 2  ;;  %v1821_v21 = vrot.slane %v1820_v33, 2 }
0x1155   : > { %v1760_v13 = vrot.slane %v1759_v59, 1  ;;  %v2963_v1 = vadd.f32 %v1774_v24, %v1773_v47  ;;  %v1815_v3 = vadd.f32 %v1814_v61, %v1813_v52  ;;  %v1849_v26 = vrot.slane %v1848_v62, 2 }
0x1156   : > { %v1827_v29 = vadd.f32 %v1826_v51, %v1825_v60  ;;  %v1779_v44 = vrot.slane %v1778_v14, 2  ;;  %v1786_v48 = vrot.slane %v1785_v18, 2  ;;  %v1793_v46 = vrot.slane %v1792_v20, 2 }
0x1157   : > { %v1809_v0 = vrot.slane %v1808_v32, 1  ;;  %v1843_v41 = vadd.f32 %v1842_v16, %v1841_v5  ;;  %v1053_v2 = vcvt.f32.s32 %v2841_v34  ;;  %v2966_v27 = vadd.f32 %v1802_v4, %v1801_v8 }
0x1158   : > { %v1837_v37 = vrot.slane %v1836_v6, 1  ;;  %v1038_v55 = vcvt.f32.s32 %v2844_v7  ;;  %v1766_v12 = vadd.f32 %v1765_v54, %v1764_v10  ;;  %v1822_v22 = vadd.f32 %v1821_v21, %v1820_v33 }
0x1159   : > { %v2454_v28 = vmov 1966171168   ;;  %v1816_v47 = vrot.slane %v1815_v3, 1  ;;  %v1850_v61 = vadd.f32 %v1849_v26, %v1848_v62  ;;  %v1828_v52 = vrot.slane %v1827_v29, 2 }
0x115a   : > { %v1349_v24 = vunpack.c.l.s4 %v2454_v28  ;;  %v1761_v23 = vadd.f32 %v1760_v13, %v1759_v59  ;;  %v1780_v53 = vadd.f32 %v1779_v44, %v1778_v14  ;;  %v1787_v57 = vadd.f32 %v1786_v48, %v1785_v18 }
0x115b   : > { %v1794_v60 = vadd.f32 %v1793_v46, %v1792_v20  ;;  %v2969_v16 = vadd.f32 %v1809_v0, %v1808_v32  ;;  %v1844_v34 = vrot.slane %v1843_v41, 1  ;;  %v1054_v43 = vshll.u32 %v1053_v2, 16 }
0x115c   : > { %v2971_v8 = vadd.f32 %v1837_v37, %v1836_v6  ;;  %v1039_v7 = vshll.u32 %v1038_v55, 16  ;;  %v1767_v10 = vrot.slane %v1766_v12, 1  ;;  %v1823_v33 = vrot.slane %v1822_v22, 1 }
0x115d   : > { %v1350_v4 = vunpack.c.0.s8 %v1349_v24  ;;  %v1829_v54 = vadd.f32 %v1828_v52, %v1827_v29  ;;  %v1851_v59 = vrot.slane %v1850_v61, 1  ;;  %v2973_v14 = vadd.f32 %v1816_v47, %v1815_v3 }
0x115e   : > { %v1781_v20 = vrot.slane %v1780_v53, 1  ;;  %v1788_v18 = vrot.slane %v1787_v57, 1  ;;  %v1795_v32 = vrot.slane %v1794_v60, 1  ;;  %v2976_v6 = vadd.f32 %v1844_v34, %v1843_v41 }
0x115f   : > { %v1768_v26 = vadd.f32 %v1767_v10, %v1766_v12  ;;  %v2978_v44 = vadd.f32 %v1823_v33, %v1822_v22  ;;  %v2981_v29 = vsub.s32 %v1350_v4, %v2615_v17  ;;  %v3408_v48 = vmov 0.0  }
0x1160   : > { %v1830_v46 = vrot.slane %v1829_v54, 1  ;;  %v3409_v0 = vmax.f32 %v2734_v45, %v2787_v35  ;;  %v2990_v41 = vadd.f32 %v1851_v59, %v1850_v61  ;;  %v1782_v37 = vadd.f32 %v1781_v20, %v1780_v53 }
0x1161   : > { %v1789_v12 = vadd.f32 %v1788_v18, %v1787_v57  ;;  %v1796_v22 = vadd.f32 %v1795_v32, %v1794_v60  ;;  %v3411_v20 = vmov 0  }
0x11b5   : > { %v1051_v30 = vpop.xlane.xlu0 %1050 }
0x11b6   : > { %v1052_v5 = vcvt.f32.s32 %v1051_v30 }
0x11b7   : > { %v1036_v51 = vpop.xlane.xlu1 %1035 }
0x11b8   : > { %v1055_v62 = vadd.s32 %v1054_v43, %v1052_v5  ;;  %v1037_v21 = vcvt.f32.s32 %v1036_v51 }
0x11ba   : > { %vm1057_vm6 = vcmp.eq.s32.totalorder %v2613_v15, %v1055_v62  ;;  %v1040_v13 = vadd.s32 %v1039_v7, %v1037_v21 }
0x11bb   : > { %v2224_v3 = vsel %vm1057_vm6, 1.0, %v3408_v48 }
0x11bc   : > { %vm1056_vm9 = vcmp.eq.s32.totalorder %v2613_v15, %v1040_v13  ;;  %v2988_v2 = vmax.f32 %v3409_v0, %v2224_v3  ;;  %v3410_v15 = vmax.f32 %v2742_v49, %v2795_v39 }
0x11bd   : > { %v2992_v55 = vpop.permute.xlu0 %1860  ;;  %v2223_v17 = vsel %vm1056_vm9, 1.0, %v3408_v48 }
0x11be   : > { %v1062_v45 = vmax.f32 %v3410_v15, %v2223_v17  ;;  %v1863_v35 = vadd.f32 %v2992_v55, %v2959_v58  ;;  %v1864_v28 = vadd.f32 %v2992_v55, %v2961_v19  ;;  %v1865_v24 = vadd.f32 %v2992_v55, %v1761_v23 }
0x11bf   : > { %v1866_v47 = vadd.f32 %v2992_v55, %v1768_v26  ;;  %v1867_v61 = vadd.f32 %v2992_v55, %v2963_v1  ;;  %v1868_v52 = vadd.f32 %v2992_v55, %v1782_v37  ;;  %v1869_v53 = vadd.f32 %v2992_v55, %v1789_v12 }
0x11c0   : > { %vm1064_vm15 = vcmp.gt.f32.partialorder %v1062_v45, 0.0  ;;  %v1870_v49 = vadd.f32 %v2992_v55, %v1796_v22  ;;  %v1879_v39 = vmul.f32 0.2, %v1863_v35  ;;  %v1880_v58 = vmul.f32 0.2, %v1864_v28 }
0x11c1   : > { %v1831_v19 = vadd.f32 %v1830_v46, %v1829_v54  ;;  %v1881_v57 = vmul.f32 0.2, %v1865_v24  ;;  %v1882_v23 = vmul.f32 0.2, %v1866_v47  ;;  %v1883_v60 = vmul.f32 0.2, %v1867_v61 }
0x11c2   : > { %v1884_v30 = vmul.f32 0.2, %v1868_v52  ;;  %v1885_v34 = vmul.f32 0.2, %v1869_v53  ;;  %v1886_v43 = vmul.f32 0.2, %v1870_v49  ;;  %v1895_v5 = vmax.f32 %v1863_v35, %v1879_v39 }
0x11c3   : > { %v1896_v1 = vmax.f32 %v1864_v28, %v1880_v58  ;;  %v1897_v7 = vmax.f32 %v1865_v24, %v1881_v57  ;;  %v1898_v10 = vmax.f32 %v1866_v47, %v1882_v23  ;;  %v3015_v33 = vadd.f32 %v2992_v55, %v2966_v27 }
0x11c4   : > { %v1899_v51 = vmax.f32 %v1867_v61, %v1883_v60  ;;  %v1900_v4 = vmax.f32 %v1868_v52, %v1884_v30  ;;  %v1901_v62 = vmax.f32 %v1869_v53, %v1885_v34  ;;  %v1969_v21 = vsub.f32 1.0, %v1062_v45 }
0x11c5   : > { %v1902_v54 = vmax.f32 %v1870_v49, %v1886_v43  ;;  %v1927_v59 = vsel %vm549_vm7, %v1896_v1, %v1895_v5  ;;  %v1345_v18 = vsel %vm1064_vm15, 1, %v3411_v20  ;;  %vm1065_vm1 = vcmp.gt.f32.partialorder %v2988_v2, 0.0 }
0x11c6   : > { %v1928_v32 = vsel %vm550_vm8, %v1897_v7, %v1927_v59  ;;  %v1347_v13 = vcombine.high %v1345_v18, %v1345_v18  ;;  %v1354_v26 = vrot.slane %v1345_v18, %v2981_v29  ;;  %1971 = vst.msk [vmem:[%s3025_s10] sm:$0xff] %vm565_vm2, %v1969_v21  ;;  %v1346_v27 = vsel %vm1065_vm1, 1, %v3411_v20 }
0x11c7   : > { %v1929_v48 = vsel %vm552_vm10, %v1898_v10, %v1928_v32  ;;  %v1396_v3 = vcombine.high %v1346_v27, %v1346_v27  ;;  %v1403_v46 = vrot.slane %v1346_v27, %v2981_v29  ;;  %v1872_v0 = vadd.f32 %v2992_v55, %v2969_v16 }
0x11c8   : > { %v1930_v37 = vsel %vm554_vm11, %v1899_v51, %v1929_v48  ;;  %v1361_v17 = vrot.slane %v1347_v13, %v2981_v29  ;;  %v1362_v12 = vcombine.high %v1354_v26, %v1354_v26  ;;  %v1873_v22 = vadd.f32 %v2992_v55, %v2973_v14 }
0x11c9   : > { %v1931_v15 = vsel %vm556_vm12, %v1900_v4, %v1930_v37  ;;  %v3042_v35 = vrot.slane %v1354_v26, %v2981_v29  ;;  %v3045_v28 = vrot.slane %v1396_v3, %v2981_v29  ;;  %v1411_v24 = vcombine.high %v1403_v46, %v1403_v46 }
0x11ca   : > { %v1932_v47 = vsel %vm558_vm13, %v1901_v62, %v1931_v15  ;;  %v3049_v16 = vrot.slane %v1362_v12, %v2981_v29  ;;  %v3052_v61 = vrot.slane %v1403_v46, %v2981_v29  ;;  %v1874_v14 = vadd.f32 %v2992_v55, %v2978_v44 }
0x11cb   : > { %v1933_v52 = vsel %vm560_vm14, %v1902_v54, %v1932_v47  ;;  %v1363_v53 = vcombine.high %v1361_v17, %v1361_v17  ;;  %v1875_v49 = vadd.f32 %v2992_v55, %v1831_v19  ;;  %v1876_v39 = vadd.f32 %v2992_v55, %v2971_v8 }
0x11cc   : > { %v3061_v58 = vsel %vm1064_vm15, %v1933_v52, 1.0  ;;  %vm1446_vm3 = vcmp.ne.s32.totalorder %v3049_v16, 0  ;;  %v1877_v57 = vadd.f32 %v2992_v55, %v2976_v6  ;;  %v1878_v23 = vadd.f32 %v2992_v55, %v2990_v41 }
0x11cd   : > { %v1945_v44 = vsel %vm565_vm2, %v3061_v58, -inf  ;;  %v1462_v60 = vsel %vm1446_vm3, 1, %v3411_v20  ;;  %v1887_v19 = vmul.f32 0.2, %v3015_v33  ;;  %v1888_v30 = vmul.f32 0.2, %v1872_v0 }
0x11ce   : > { %1946 = vmax.xlane.f32.xlu1 %v1945_v44  ;;  %v1484_v8 = vrot.slane %v1462_v60, %v2801_v42  ;;  %v1889_v45 = vmul.f32 0.2, %v1873_v22  ;;  %v1890_v34 = vmul.f32 0.2, %v1874_v14  ;;  %v1891_v43 = vmul.f32 0.2, %v1875_v49 }
0x11cf   : > { %v1892_v5 = vmul.f32 0.2, %v1876_v39  ;;  %v1893_v1 = vmul.f32 0.2, %v1877_v57  ;;  %v1894_v6 = vmul.f32 0.2, %v1878_v23  ;;  %v1903_v7 = vmax.f32 %v3015_v33, %v1887_v19 }
0x11d0   : > { %vm1542_vm4 = vcmp.eq.s32.totalorder %v1484_v8, 1  ;;  %v1904_v41 = vmax.f32 %v1872_v0, %v1888_v30  ;;  %v1905_v55 = vmax.f32 %v1873_v22, %v1889_v45  ;;  %v1906_v10 = vmax.f32 %v1874_v14, %v1890_v34 }
0x11d1   : > { %v1558_v51 = vsel %vm1542_vm4, %v2860_v9, -1e+30  ;;  %v1907_v4 = vmax.f32 %v1875_v49, %v1891_v43  ;;  %v1908_v62 = vmax.f32 %v1876_v39, %v1892_v5  ;;  %v1909_v21 = vmax.f32 %v1877_v57, %v1893_v1 }
0x11d2   : > { %v1576_v54 = vsel %vm565_vm2, %v1558_v51, -inf  ;;  %v1910_v59 = vmax.f32 %v1878_v23, %v1894_v6  ;;  %v1934_v18 = vsel %vm549_vm7, %v1904_v41, %v1903_v7  ;;  %v1970_v32 = vsub.f32 1.0, %v2988_v2 }
0x11d3   : > { %1577 = vmax.xlane.f32.xlu0 %v1576_v54  ;;  %v1935_v33 = vsel %vm550_vm8, %v1905_v55, %v1934_v18  ;;  %v1391_v13 = vrot.slane %v1363_v53, %v2981_v29  ;;  %vm1453_vm5 = vcmp.ne.s32.totalorder %v3052_v61, 0  ;;  %v3082_v26 = vrot.slane %v1361_v17, %v2981_v29 }
0x11d4   : > { %v1936_v9 = vsel %vm552_vm10, %v1906_v10, %v1935_v33  ;;  %1972 = vst.msk [vmem:[%s3025_s10 + $0x8] sm:$0xff] %vm565_vm2, %v1970_v32  ;;  %v1469_v27 = vsel %vm1453_vm5, 1, %v3411_v20  ;;  %vm1445_vm6 = vcmp.ne.s32.totalorder %v3042_v35, 0  ;;  %v1433_v48 = vrot.slane %v1411_v24, %v2981_v29 }
0x11d5   : > { %v1937_v3 = vsel %vm554_vm11, %v1907_v4, %v1936_v9  ;;  %vm1450_vm9 = vcmp.ne.s32.totalorder %v1391_v13, 0  ;;  %v1512_v46 = vrot.slane %v1469_v27, %v2801_v42  ;;  %v1393_v0 = vcombine.high %v3082_v26, %v3082_v26 }
0x11d6   : > { %v1938_v37 = vsel %vm556_vm12, %v1908_v62, %v1937_v3  ;;  %v1466_v17 = vsel %vm1450_vm9, 1, %v3411_v20  ;;  %v1461_v12 = vsel %vm1445_vm6, 1, %v3411_v20  ;;  %v1395_v22 = vcombine.high %v1391_v13, %v1391_v13  ;;  %v3424_v3 = vld [vmem:[#allocation10_spill] sm:$0xff] }
0x11d7   : > { %v1939_v15 = vsel %vm558_vm13, %v1909_v21, %v1938_v37  ;;  %v1500_v47 = vrot.slane %v1466_v17, %v2801_v42  ;;  %vm3099_vm15 = vcmp.eq.s32.totalorder %v1512_v46, 1  ;;  %vm1451_vm3 = vcmp.ne.s32.totalorder %v1393_v0, 0  ;;  %v3425_v37 = vld [vmem:[#allocation13_spill] sm:$0xff] }
0x11d8   : > { %v1940_v14 = vsel %vm560_vm14, %v1910_v59, %v1939_v15  ;;  %v1565_v52 = vsel %vm3099_vm15, %v2873_v25, -1e+30  ;;  %v1467_v53 = vsel %vm1451_vm3, 1, %v3411_v20  ;;  %v1480_v49 = vrot.slane %v1461_v12, %v2801_v42 }
0x11d9   : > { %v3111_v39 = vsel %vm1065_vm1, %v1940_v14, 1.0  ;;  %vm1546_vm4 = vcmp.eq.s32.totalorder %v1500_v47, 1  ;;  %v1504_v57 = vrot.slane %v1467_v53, %v2801_v42  ;;  %vm1452_vm6 = vcmp.ne.s32.totalorder %v1395_v22, 0 }
0x11da   : > { %v1948_v23 = vsel %vm565_vm2, %v3111_v39, -inf  ;;  %v1562_v44 = vsel %vm1546_vm4, %v2925_v36, -1e+30  ;;  %vm3117_vm5 = vcmp.eq.s32.totalorder %v1480_v49, 1  ;;  %v1468_v30 = vsel %vm1452_vm6, 1, %v3411_v20 }
0x11db   : > { %1949 = vmax.xlane.f32.xlu1 %v1948_v23  ;;  %v1588_v25 = vsel %vm565_vm2, %v1562_v44, -inf  ;;  %vm3122_vm9 = vcmp.eq.s32.totalorder %v1504_v57, 1  ;;  %v1557_v19 = vsel %vm3117_vm5, %v2856_v63, -1e+30  ;;  %v1508_v8 = vrot.slane %v1468_v30, %v2801_v42  ;;  %v3426_v57 = vld [vmem:[#allocation9_spill] sm:$0xff] }
0x11dc   : > { %1589 = vmax.xlane.f32.xlu0 %v1588_v25  ;;  %v1563_v36 = vsel %vm3122_vm9, %v2927_v38, -1e+30  ;;  %vm1454_vm1 = vcmp.ne.s32.totalorder %v1433_v48, 0  ;;  %v1441_v34 = vcombine.high %v3052_v61, %v3052_v61  ;;  %v1392_v43 = vcombine.high %v3042_v35, %v3042_v35 }
0x11dd   : > { %v1470_v45 = vsel %vm1454_vm1, 1, %v3411_v20  ;;  %v1597_v63 = vsel %vm565_vm2, %v1565_v52, -inf  ;;  %vm3140_vm15 = vcmp.eq.s32.totalorder %v1508_v8, 1  ;;  %v1443_v38 = vcombine.high %v1433_v48, %v1433_v48 }
0x11de   : > { %v1516_v1 = vrot.slane %v1470_v45, %v2801_v42  ;;  %v1591_v6 = vsel %vm565_vm2, %v1563_v36, -inf  ;;  %vm1455_vm3 = vcmp.ne.s32.totalorder %v1441_v34, 0  ;;  %vm1447_vm4 = vcmp.ne.s32.totalorder %v1392_v43, 0 }
0x11df   : > { %1598 = vmax.xlane.f32.xlu1 %v1597_v63  ;;  %v1564_v61 = vsel %vm3140_vm15, %v2929_v40, -1e+30  ;;  %v1471_v7 = vsel %vm1455_vm3, 1, %v3411_v20  ;;  %v1463_v41 = vsel %vm1447_vm4, 1, %v3411_v20  ;;  %v1573_v4 = vsel %vm565_vm2, %v1557_v19, -inf }
0x11e0   : > { %1592 = vmax.xlane.f32.xlu0 %v1591_v6  ;;  %vm3149_vm5 = vcmp.eq.s32.totalorder %v1516_v1, 1  ;;  %v1520_v10 = vrot.slane %v1471_v7, %v2801_v42  ;;  %v1488_v51 = vrot.slane %v1463_v41, %v2801_v42  ;;  %vm1456_vm6 = vcmp.ne.s32.totalorder %v1443_v38, 0  ;;  %v3427_v7 = vld [vmem:[#allocation15_spill] sm:$0xff] }
0x11e1   : > { %v1566_v55 = vsel %vm3149_vm5, %v2895_v56, -1e+30  ;;  %v1412_v40 = vcombine.high %v3045_v28, %v3045_v28  ;;  %v1594_v62 = vsel %vm565_vm2, %v1564_v61, -inf  ;;  %v1426_v56 = vrot.slane %v3045_v28, %v2981_v29 }
0x11e2   : > { %vm3164_vm9 = vcmp.eq.s32.totalorder %v1488_v51, 1  ;;  %vm1551_vm1 = vcmp.eq.s32.totalorder %v1520_v10, 1  ;;  %v1472_v59 = vsel %vm1456_vm6, 1, %v3411_v20  ;;  %v1600_v18 = vsel %vm565_vm2, %v1566_v55, -inf }
0x11e3   : > { %1574 = vmax.xlane.f32.xlu1 %v1573_v4  ;;  %v1559_v54 = vsel %vm3164_vm9, %v2889_v50, -1e+30  ;;  %vm1449_vm15 = vcmp.ne.s32.totalorder %v3082_v26, 0  ;;  %v1394_v32 = vcombine.high %v3049_v16, %v3049_v16  ;;  %v1567_v33 = vsel %vm1551_vm1, %v2906_v11, -1e+30 }
0x11e4   : > { %1595 = vmax.xlane.f32.xlu0 %v1594_v62  ;;  %v1440_v28 = vrot.slane %v1412_v40, %v2981_v29  ;;  %v1524_v13 = vrot.slane %v1472_v59, %v2801_v42  ;;  %v1465_v9 = vsel %vm1449_vm15, 1, %v3411_v20  ;;  %v1603_v50 = vsel %vm565_vm2, %v1567_v33, -inf }
0x11e5   : > { %vm1448_vm3 = vcmp.ne.s32.totalorder %v1394_v32, 0  ;;  %v1496_v27 = vrot.slane %v1465_v9, %v2801_v42  ;;  %v1579_v16 = vsel %vm565_vm2, %v1559_v54, -inf  ;;  %vm1457_vm9 = vcmp.ne.s32.totalorder %v1426_v56, 0  ;;  %v3431_v9 = vld [vmem:[#allocation12_spill] sm:$0xff] }
0x11e6   : > { %vm1552_vm4 = vcmp.eq.s32.totalorder %v1524_v13, 1  ;;  %v1464_v26 = vsel %vm1448_vm3, 1, %v3411_v20  ;;  %v1473_v60 = vsel %vm1457_vm9, 1, %v3411_v20  ;;  %vm1458_vm1 = vcmp.ne.s32.totalorder %v1440_v28, 0 }
0x11e7   : > { %1601 = vmax.xlane.f32.xlu1 %v1600_v18  ;;  %v1568_v11 = vsel %vm1552_vm4, %v2917_v31, -1e+30  ;;  %vm1545_vm5 = vcmp.eq.s32.totalorder %v1496_v27, 1  ;;  %v1492_v29 = vrot.slane %v1464_v26, %v2801_v42  ;;  %v1528_v30 = vrot.slane %v1473_v60, %v2801_v42 }
0x11e8   : > { %v1606_v48 = vsel %vm565_vm2, %v1568_v11, -inf  ;;  %v1561_v46 = vsel %vm1545_vm5, %v3424_v3, -1e+30  ;;  %v1474_v8 = vsel %vm1458_vm1, 1, %v3411_v20  ;;  %v1444_v43 = vcombine.high %v1440_v28, %v1440_v28 }
0x11e9   : > { %vm1544_vm6 = vcmp.eq.s32.totalorder %v1492_v29, 1  ;;  %v1585_v0 = vsel %vm565_vm2, %v1561_v46, -inf  ;;  %vm1553_vm3 = vcmp.eq.s32.totalorder %v1528_v30, 1  ;;  %v1532_v1 = vrot.slane %v1474_v8, %v2801_v42 }
0x11ea   : > { %v1560_v17 = vsel %vm1544_vm6, %v3425_v37, -1e+30  ;;  %vm1460_vm4 = vcmp.ne.s32.totalorder %v1444_v43, 0  ;;  %v1569_v41 = vsel %vm1553_vm3, %v3427_v7, -1e+30 }
0x11eb   : > { %1604 = vmax.xlane.f32.xlu1 %v1603_v50  ;;  %v1582_v12 = vsel %vm565_vm2, %v1560_v17, -inf  ;;  %vm1554_vm5 = vcmp.eq.s32.totalorder %v1532_v1, 1  ;;  %v1476_v51 = vsel %vm1460_vm4, 1, %v3411_v20  ;;  %v1609_v40 = vsel %vm565_vm2, %v1569_v41, -inf  ;;  %v3434_v17 = vld [vmem:[#allocation14_spill] sm:$0xff] }
0x11ec   : > { %v1540_v32 = vrot.slane %v1476_v51, %v2801_v42 }
0x11ee   : > { %vm3236_vm9 = vcmp.eq.s32.totalorder %v1540_v32, 1 }
0x11ef   : > { %1580 = vmax.xlane.f32.xlu1 %v1579_v16 }
0x11f3   : > { %1607 = vmax.xlane.f32.xlu1 %v1606_v48 }
0x11f7   : > { %1586 = vmax.xlane.f32.xlu1 %v1585_v0 }
0x11fb   : > { %1583 = vmax.xlane.f32.xlu1 %v1582_v12  ;;  %v1572_v12 = vsel %vm3236_vm9, %v3434_v17, -1e+30 }
0x1257   : > { %v1947_v22 = vpop.xlane.xlu1 %1946 }
0x1258   : > { %v1951_v31 = vsub.f32 %v3061_v58, %v1947_v22  ;;  %v1442_v58 = vcombine.high %v1426_v56, %v1426_v56  ;;  %v3428_v56 = vld [vmem:[#allocation11_spill] sm:$0xff] }
0x1259   : > { %v1570_v54 = vsel %vm1554_vm5, %v3428_v56, -1e+30 }
0x125a   : > { %v1953_v24 = vmul.f32 1.442695, %v1951_v31  ;;  %vm1459_vm15 = vcmp.ne.s32.totalorder %v1442_v58, 0  ;;  %v1612_v28 = vsel %vm565_vm2, %v1570_v54, -inf }
0x125b   : > { %v1475_v6 = vsel %vm1459_vm15, 1, %v3411_v20 }
0x125c   : > { %v1578_v2 = vpop.xlane.xlu0 %1577  ;;  %v1536_v10 = vrot.slane %v1475_v6, %v2801_v42 }
0x125d   : > { %v1644_v33 = vrot.slane %v1578_v2, %v3426_v57 }
0x125e   : > { %vm3223_vm6 = vcmp.eq.s32.totalorder %v1536_v10, 1 }
0x125f   : > { %v1571_v50 = vsel %vm3223_vm6, %v3431_v9, -1e+30 }
0x1260   : > { %v1615_v46 = vsel %vm565_vm2, %v1571_v50, -inf }
0x1264   : > { %v1950_v15 = vpop.xlane.xlu1 %1949 }
0x1265   : > { %v1952_v47 = vsub.f32 %v3111_v39, %v1950_v15  ;;  %v1590_v38 = vpop.xlane.xlu0 %1589 }
0x1266   : > { %v1660_v48 = vrot.slane %v1590_v38, %v3426_v57 }
0x1267   : > { %v1955_v14 = vmul.f32 1.442695, %v1952_v47 }
0x1268   : > { %v1599_v52 = vpop.xlane.xlu1 %1598 }
0x1269   : > { %2335 = vpow2.f32 %v1955_v14  ;;  %v1672_v23 = vrot.slane %v1599_v52, %v3426_v57  ;;  %v1593_v62 = vpop.xlane.xlu0 %1592 }
0x126a   : > { %2337 = vpow2.f32 %v1953_v24  ;;  %v1664_v0 = vrot.slane %v1593_v62, %v3426_v57  ;;  %v1618_v24 = vsel %vm565_vm2, %v1572_v12, -inf }
0x126c   : > { %v1575_v53 = vpop.xlane.xlu1 %1574 }
0x126d   : > { %v1640_v59 = vrot.slane %v1575_v53, %v3426_v57  ;;  %v1596_v42 = vpop.xlane.xlu0 %1595 }
0x126e   : > { %v1668_v22 = vrot.slane %v1596_v42, %v3426_v57 }
0x126f   : > { %v1701_v27 = vsel %vm549_vm7, %v1644_v33, %v1640_v59 }
0x1270   : > { %v1602_v49 = vpop.xlane.xlu1 %1601 }
0x1271   : > { %v1676_v44 = vrot.slane %v1602_v49, %v3426_v57 }
0x1273   : > { %v1708_v25 = vsel %vm549_vm7, %v1676_v44, %v1672_v23 }
0x1274   : > { %v1605_v39 = vpop.xlane.xlu1 %1604 }
0x1275   : > { %v1680_v19 = vrot.slane %v1605_v39, %v3426_v57 }
0x1276   : > { %v3201_v36 = vpop.eup %2335 }
0x1277   : > { %v1709_v45 = vsel %vm550_vm8, %v1680_v19, %v1708_v25  ;;  %v1960_v34 = vsel %vm565_vm2, %v3201_v36, 0.0  ;;  %v3207_v63 = vpop.eup %2337 }
0x1278   : > { %v1581_v5 = vpop.xlane.xlu1 %1580  ;;  %1961 = vadd.xlane.f32.xlu1 %v1960_v34  ;;  %v1957_v61 = vsel %vm565_vm2, %v3207_v63, 0.0 }
0x1279   : > { %v1648_v20 = vrot.slane %v1581_v5, %v3426_v57 }
0x127b   : > { %v1702_v11 = vsel %vm550_vm8, %v1648_v20, %v1701_v27 }
0x127c   : > { %v1608_v35 = vpop.xlane.xlu1 %1607  ;;  %1958 = vadd.xlane.f32.xlu1 %v1957_v61 }
0x127d   : > { %v1684_v55 = vrot.slane %v1608_v35, %v3426_v57 }
0x127f   : > { %v3218_v4 = vsel %vm552_vm10, %v1684_v55, %v1709_v45 }
0x1280   : > { %1610 = vmax.xlane.f32.xlu1 %v1609_v40  ;;  %v1587_v21 = vpop.xlane.xlu1 %1586 }
0x1281   : > { %v1656_v29 = vrot.slane %v1587_v21, %v3426_v57 }
0x1284   : > { %1613 = vmax.xlane.f32.xlu1 %v1612_v28  ;;  %v1584_v13 = vpop.xlane.xlu1 %1583 }
0x1285   : > { %v1652_v26 = vrot.slane %v1584_v13, %v3426_v57 }
0x1287   : > { %v1703_v3 = vsel %vm552_vm10, %v1652_v26, %v1702_v11 }
0x1288   : > { %v1704_v37 = vsel %vm554_vm11, %v1656_v29, %v1703_v3  ;;  %1616 = vmax.xlane.f32.xlu1 %v1615_v46 }
0x1289   : > { %v1705_v31 = vsel %vm556_vm12, %v1660_v48, %v1704_v37 }
0x128a   : > { %v1706_v15 = vsel %vm558_vm13, %v1664_v0, %v1705_v31 }
0x128b   : > { %v1707_v47 = vsel %vm560_vm14, %v1668_v22, %v1706_v15 }
0x128c   : > { %1717 = vst.msk [vmem:[%s3254_s19] sm:$0xff] %vm428_vm0, %v1707_v47  ;;  %1619 = vmax.xlane.f32.xlu1 %v1618_v24 }
0x128d   : > { %2356 = shalt.err (!%p2353_p5)
}
0x128e   : > { %s2357_s10 = scalar_lea.hbm %s3269_s25, 256  ;;  %s2361_s17 = scalar_lea.hbm %s3381_s9, 2048 }
0x128f   : > { %p2358_p6 = scmp.ne.s32.totalorder %s3269_s25, %s2357_s10  ;;  %p2362_p10 = scmp.lt.s32.totalorder %s3269_s25, %s3381_s9 }
0x1290   : > { %p2363_p11 = scmp.lt.s32.totalorder %s2361_s17, %s2357_s10 }
0x1291   : > { %p2359_p7 = pnand %p2358_p6, %p2552_p4 }
0x1292   : > { %p2364_p12 = por %p2363_p11, %p2362_p10 }
0x1293   : > { %p2360_p9 = pneg %p2359_p7 }
0x1295   : > { %p2365_p13 = pnand %p2364_p12, %p2360_p9 }
0x1297   : > { %2368 = shalt.err (!%p2365_p13)
}
0x1298   : > { %s3396_s0 = smov 128   ;;  %s2457_s30 = smov 8  }
0x1299   : > { %s3435_s6 = scalar_lea.sflag [#allocation6], %s2996_s29  ;;  %s3436_s21 = sshll.u32 %s2996_s29, 4 }
0x129a   : > { %2269 = dma.vmem_to_hbm [thread:$0]  (%p2552_p4), %s3272_s27, 256, %s3269_s25, %s3435_s6, %s3396_s0, %s3396_s0, %s2457_s30  }
0x129b   : > { %s386_s28 = scalar_lea.vmem [#allocation3], %s3436_s21  ;;  %s3437_s25 = sshll.u32 %s2441_s14, 8 }
0x129c   : > { %s2007_s10 = sshll.u32 %s386_s28, 4  ;;  %s3313_s26 = scalar_lea.hbm %s3380_s8, %s3437_s25  ;;  %s3315_s10 = int_to_ptr.vmem [resolvable:$true] %s2007_s10 }
0x129d   : > { %s1983_s14 = scalar_lea.sflag [#allocation4], %s2996_s29  ;;  %s2369_s17 = scalar_lea.vmem %s3315_s10, 256 }
0x129e   : > { %p2370_p0 = scmp.ne.s32.totalorder %s3315_s10, %s2369_s17  ;;  %s2458_s6 = smov [#allocation3]  }
0x129f   : > { %s2373_s21 = sshll.u32 %s2458_s6, 4  ;;  %s2374_s21 = int_to_ptr.vmem [resolvable:$false] %s2373_s21 }
0x12a0   : > { %p2371_p1 = pnand %p2370_p0, %p2552_p4  ;;  %s2375_s25 = scalar_lea.vmem %s2374_s21, 512 }
0x12a1   : > { %p2376_p3 = scmp.lt.s32.totalorder %s3315_s10, %s2374_s21  ;;  %p2377_p5 = scmp.lt.s32.totalorder %s2375_s25, %s2369_s17 }
0x12a2   : > { %p2372_p2 = pneg %p2371_p1 }
0x12a3   : > { %p2378_p6 = por %p2377_p5, %p2376_p3 }
0x12a5   : > { %p2379_p7 = pnand %p2378_p6, %p2372_p2 }
0x1301   : > { %v1962_v14 = vpop.xlane.xlu1 %1961 }
0x1302   : > { %2339 = vrcp.f32 %v1962_v14 }
0x1305   : > { %v1959_v52 = vpop.xlane.xlu1 %1958 }
0x1306   : > { %2341 = vrcp.f32 %v1959_v52 }
0x1309   : > { %v1611_v53 = vpop.xlane.xlu1 %1610 }
0x130a   : > { %v1688_v60 = vrot.slane %v1611_v53, %v3426_v57 }
0x130c   : > { %v1711_v30 = vsel %vm554_vm11, %v1688_v60, %v3218_v4 }
0x130d   : > { %v1614_v49 = vpop.xlane.xlu1 %1613 }
0x130e   : > { %v1692_v58 = vrot.slane %v1614_v49, %v3426_v57 }
0x130f   : > { %v2340_v23 = vpop.eup %2339 }
0x1310   : > { %v1966_v44 = vmul.f32 %v2340_v23, %v3201_v36  ;;  %v1712_v8 = vsel %vm556_vm12, %v1692_v58, %v1711_v30 }
0x1311   : > { %v1617_v25 = vpop.xlane.xlu1 %1616 }
0x1312   : > { %1968 = vst.msk [vmem:[%s386_s28 + $0x8] sm:$0xff] %vm565_vm2, %v1966_v44  ;;  %v1696_v39 = vrot.slane %v1617_v25, %v3426_v57 }
0x1313   : > { %v2342_v2 = vpop.eup %2341 }
0x1314   : > { %v1965_v19 = vmul.f32 %v2342_v2, %v3207_v63  ;;  %v1713_v34 = vsel %vm558_vm13, %v1696_v39, %v1712_v8 }
0x1315   : > { %v1620_v36 = vpop.xlane.xlu1 %1619 }
0x1316   : > { %v1700_v45 = vrot.slane %v1620_v36, %v3426_v57  ;;  %1967 = vst.msk [vmem:[%s386_s28] sm:$0xff] %vm565_vm2, %v1965_v19 }
0x1317   : > { %2382 = shalt.err (!%p2379_p7)
}
0x1318   : > { %s2383_s28 = scalar_lea.hbm %s3313_s26, 256  ;;  %s2387_s24 = scalar_lea.hbm %s3380_s8, 2048 }
0x1319   : > { %p2384_p9 = scmp.ne.s32.totalorder %s3313_s26, %s2383_s28  ;;  %p2388_p12 = scmp.lt.s32.totalorder %s3313_s26, %s3380_s8 }
0x131a   : > { %p2389_p13 = scmp.lt.s32.totalorder %s2387_s24, %s2383_s28 }
0x131b   : > { %p2385_p10 = pnand %p2384_p9, %p2552_p4 }
0x131c   : > { %p2390_p0 = por %p2389_p13, %p2388_p12 }
0x131d   : > { %p2386_p11 = pneg %p2385_p10 }
0x131f   : > { %p2391_p1 = pnand %p2390_p0, %p2386_p11 }
0x1321   : > { %2394 = shalt.err (!%p2391_p1)
}
0x1322   : > { %s3438_s17 = smov 128   ;;  %v1714_v57 = vsel %vm560_vm14, %v1700_v45, %v1713_v34 }
0x1323   : > { %2268 = dma.vmem_to_hbm [thread:$0]  (%p2552_p4), %s3315_s10, 256, %s3313_s26, %s1983_s14, %s3438_s17, %s3438_s17, %s2457_s30  }
0x1324   : > { %1718 = vst.msk [vmem:[%s3254_s19 + $0x8] sm:$0xff] %vm428_vm0, %v1714_v57 }
0x1325 PF: > { %p2279_p2 = scmp.ge.s32.totalorder %s2449_s16, 2  ;;  %s2052_s0 = sand.u32 1, %s2429_s11  }
0x1326   : > { %s2053_s20 = scalar_lea.sflag [#allocation4], %s2052_s0 }
0x1327   : > { %p2273_p3 = pnand %p2279_p2, %p2559_p8 }
0x1329   : > { %p2274_p5 = pneg %p2273_p3 }
0x132b   : > { %2420 = dma.done.wait (%p2274_p5), %s2053_s20, 256  }
0x132c   : > { %2422 = vsyncadd (%p2274_p5), %s2053_s20, 4294967040  ;;  %s2062_s21 = scalar_lea.sflag [#allocation6], %s2052_s0 }
0x132d   : > { %2424 = dma.done.wait (%p2274_p5), %s2062_s21, 256  }
0x132e   : > { %2426 = vsyncadd (%p2274_p5), %s2062_s21, 4294967040  ;;  %s28_s16 = sadd.s32 1, %s2449_s16   ;;  %s3439_s11 = smov %s2433_s12 }
0x132f   : > { %p25_p4 = scmp.ge.s32.totalorder %s28_s16, 10   ;;  %s3440_s12 = smov %s2437_s13 }
0x1330   : > { %s3441_s13 = smov %s2565_s23  ;;  %s3442_s14 = smov %s2445_s15 }
0x1331   : > { %s3443_s15 = smov %s3445_s18  ;;  %27 = sbr.rel (!%p25_p4) target bundleno = 9 (0x9), region = 115 }
0x1336   :  { %2067 = vsyncpa [#allocation4], 1 }
0x1337   :  { %2069 = vsyncpa [#allocation4 + $0x1], 1 }
0x1338   :  { %2070 = vsyncpa [#allocation6], 1 }
0x1339   :  { %2072 = vsyncpa [#allocation6 + $0x1], 1 }

</bundles_post_ra>
